<compile_context>
chip_gen: v7x
topology: tpu7x:2x2x1
jax: 0.10.0
libtpu: 0.0.40
codegen_flags: <defaults>
</compile_context>

<pallas_src>
import functools

import jax
import jax.numpy as jnp
import numpy as np
from jax import lax
from jax.experimental import pallas as pl
from jax.experimental.pallas import tpu as pltpu


# --------------------------------------------------------------------------
# Pallas kernel: one batch-group per grid step, (C, S*HW) layout.
# --------------------------------------------------------------------------
def lem_kernel(x_ref, mask_ref, tapmask_ref, w1_ref, b1_ref, gamma_ref,
               beta_ref, w2_ref, b2_ref, gm_ref, o_ref, *, W, HW, S):
    # x_ref       : (1, C, S*HW)  activations (channels on sublanes, spatial/batch on lanes)
    # mask_ref    : (1, 1, S*HW)  pre-thresholded attention mask
    # tapmask_ref : (9, C, S*HW)  per-tap validity masks (conv zero padding), f32
    # w*_ref      : (9, C, C)     per-tap conv weights [k, cout, cin], bf16
    # b*, gamma, beta : (C, 1)    f32
    # gm_ref      : (C, C)        group-mix matrix (includes 1/(HW*Cg)), f32
    # o_ref       : (1, C, S*HW)
    _, C, SHW = x_ref.shape

    def conv3x3(src, w_ref, b_ref):
        # Per-tap: lane roll (XLU) + border mask (VPU) + small bf16 MXU matmul,
        # accumulated in f32 registers.  No im2col scratch round trip.
        acc = None
        for k in range(9):
            dy, dx = k // 3 - 1, k % 3 - 1
            shift = (-(dy * W + dx)) % SHW
            shifted = pltpu.roll(src, shift=shift, axis=1)              # (C, S*HW)
            patch = (shifted * tapmask_ref[k]).astype(jnp.bfloat16)     # f32 VPU, cast
            part = jnp.dot(w_ref[k], patch,
                           preferred_element_type=jnp.float32)          # MXU
            acc = part if acc is None else acc + part
        return acc + b_ref[...]

    x = x_ref[0]                                                        # (C, S*HW) f32

    # --- conv1 ---
    h = conv3x3(x, w1_ref, b1_ref)

    # --- GroupNorm(8, C) + ReLU, per sample segment ---
    # Lane reduce first (exact f32), then a tiny (C,C)@(C,1) group mix.
    segs = []
    for s in range(S):
        hs = h[:, s * HW:(s + 1) * HW]                                  # aligned slice
        mean = jnp.dot(gm_ref[...],
                       jnp.sum(hs, axis=1, keepdims=True),
                       preferred_element_type=jnp.float32)              # (C, 1)
        d = hs - mean
        var = jnp.dot(gm_ref[...],
                      jnp.sum(d * d, axis=1, keepdims=True),
                      preferred_element_type=jnp.float32)               # (C, 1)
        gn = d * (lax.rsqrt(var + 1e-5) * gamma_ref[...]) + beta_ref[...]
        segs.append(jnp.maximum(gn, 0.0))                               # ReLU
    h = segs[0] if S == 1 else jnp.concatenate(segs, axis=1)            # (C, S*HW)

    # --- conv2 ---
    h2 = conv3x3(h, w2_ref, b2_ref)

    # --- residual add gated by the (pre-thresholded) attention mask ---
    o_ref[0] = x + h2 * mask_ref[0]


# --------------------------------------------------------------------------
# Wrapper
# --------------------------------------------------------------------------
def _single_tensorcore_chip():
    """True on chips with one TensorCore per chip (v5e / v6e), where a
    parallel batch grid buys nothing and lane-merging the batch cuts the
    per-grid-step overhead.  Falls back to False (keep grid=(N,))."""
    try:
        kind = jax.devices()[0].device_kind.lower()
    except Exception:
        return False
    return any(t in kind for t in
               ("v5e", "v5 lite", "v5lite", "v6e", "v6 lite", "v6lite"))


@functools.partial(jax.jit, static_argnames=("samples_per_step",))
def _lem_pallas(x_nchw, mask_thr, w1_9cc, b1, gamma, beta, w2_9cc, b2, gm,
                tapmask_9hw, *, samples_per_step):
    N, C, H, W = x_nchw.shape
    HW = H * W
    S = samples_per_step
    G = N // S
    SHW = S * HW

    def merge(a):                        # (N, D, HW) -> (G, D, S*HW), samples on lanes
        if S == 1:
            return a
        D = a.shape[1]
        return a.reshape(G, S, D, HW).transpose(0, 2, 1, 3).reshape(G, D, SHW)

    x_flat = merge(x_nchw.reshape(N, C, HW).astype(jnp.float32))
    m_flat = merge(mask_thr)                                          # (G, 1, S*HW)
    tap = jnp.broadcast_to(
        jnp.tile(tapmask_9hw, (1, S))[:, None, :], (9, C, SHW)
    ).astype(jnp.float32)                                             # (9, C, S*HW)

    out_flat = pl.pallas_call(
        functools.partial(lem_kernel, W=W, HW=HW, S=S),
        out_shape=jax.ShapeDtypeStruct((G, C, SHW), jnp.float32),
        grid_spec=pltpu.PrefetchScalarGridSpec(
            num_scalar_prefetch=0,
            grid=(G,),
            in_specs=[
                pl.BlockSpec((1, C, SHW), lambda g: (g, 0, 0)),      # x
                pl.BlockSpec((1, 1, SHW), lambda g: (g, 0, 0)),      # thresholded mask
                pl.BlockSpec((9, C, SHW), lambda g: (0, 0, 0)),      # tap masks
                pl.BlockSpec((9, C, C), lambda g: (0, 0, 0)),        # w1 (bf16)
                pl.BlockSpec((C, 1), lambda g: (0, 0)),              # b1
                pl.BlockSpec((C, 1), lambda g: (0, 0)),              # gamma
                pl.BlockSpec((C, 1), lambda g: (0, 0)),              # beta
                pl.BlockSpec((9, C, C), lambda g: (0, 0, 0)),        # w2 (bf16)
                pl.BlockSpec((C, 1), lambda g: (0, 0)),              # b2
                pl.BlockSpec((C, C), lambda g: (0, 0)),              # group-mix matrix
            ],
            out_specs=pl.BlockSpec((1, C, SHW), lambda g: (g, 0, 0)),
        ),
        compiler_params=pltpu.CompilerParams(
            dimension_semantics=("parallel",)),                      # v7x: 2 TCs
    )(x_flat, m_flat, tap, w1_9cc, b1, gamma, beta, w2_9cc, b2, gm)

    if S == 1:
        return out_flat.reshape(N, C, H, W)
    return (out_flat.reshape(G, C, S, HW).transpose(0, 2, 1, 3)
            .reshape(N, C, H, W))


def local_enhancement_pallas(x, attention_mask, w1_oihw, b1, gamma, beta,
                             w2_oihw, b2):
    N, C, H, W = x.shape
    HW = H * W

    # Attention-mask threshold hoisted out of the kernel.
    mask_thr = (attention_mask > 1.2).astype(jnp.float32).reshape(N, 1, HW)

    # Per-tap conv weights (9, Cout, Cin) as bf16 MXU operands.
    w1_9cc = jnp.transpose(w1_oihw, (2, 3, 0, 1)).reshape(9, C, C).astype(jnp.bfloat16)
    w2_9cc = jnp.transpose(w2_oihw, (2, 3, 0, 1)).reshape(9, C, C).astype(jnp.bfloat16)

    # GroupNorm group-mix matrix (includes the 1/(HW*Cg) factor).
    Cg = C // 8
    gid = jnp.arange(C) // Cg
    gm = (gid[:, None] == gid[None, :]).astype(jnp.float32) / (HW * Cg)

    # Per-tap border-validity masks implementing the 3x3 conv's zero padding.
    hh, ww = jnp.meshgrid(jnp.arange(H), jnp.arange(W), indexing="ij")
    taps = []
    for ky in range(3):
        for kx in range(3):
            dy, dx = ky - 1, kx - 1
            valid = ((hh + dy >= 0) & (hh + dy < H)
                     & (ww + dx >= 0) & (ww + dx < W))
            taps.append(valid.reshape(-1))
    tapmask = jnp.stack(taps).astype(jnp.float32)                     # (9, HW)

    # Chip-gated batch handling: lane-merge the batch on single-TC chips,
    # keep the parallel batch grid on multi-TC chips (v7x).
    samples_per_step = N if _single_tensorcore_chip() else 1

    return _lem_pallas(x.astype(jnp.float32), mask_thr, w1_9cc,
                       b1.reshape(C, 1), gamma.reshape(C, 1),
                       beta.reshape(C, 1), w2_9cc, b2.reshape(C, 1),
                       gm, tapmask, samples_per_step=samples_per_step)


# --------------------------------------------------------------------------
# Pure-JAX reference (mirrors the PyTorch forward exactly, full f32)
# --------------------------------------------------------------------------
def ref_forward(x_nchw, attention_mask, w1_oihw, b1, gamma, beta, w2_oihw, b2):
    def conv(x, w, b):
        y = lax.conv_general_dilated(
            x, w, window_strides=(1, 1), padding="SAME",
            dimension_numbers=("NCHW", "OIHW", "NCHW"),
            precision=lax.Precision.HIGHEST)
        return y + b[None, :, None, None]

    h = conv(x_nchw, w1_oihw, b1)
    N, C, H, W = h.shape
    G, Cg = 8, C // 8
    hg = h.reshape(N, G, Cg, H, W)
    mean = hg.mean(axis=(2, 3, 4), keepdims=True)
    var = hg.var(axis=(2, 3, 4), keepdims=True)
    h = ((hg - mean) / jnp.sqrt(var + 1e-5)).reshape(N, C, H, W)
    h = h * gamma[None, :, None, None] + beta[None, :, None, None]
    h = jnp.maximum(h, 0.0)
    h = conv(h, w2_oihw, b2)
    m = (attention_mask > 1.2).astype(jnp.float32)[:, None, :, :]
    return x_nchw + h * m


# --------------------------------------------------------------------------
# Main
# --------------------------------------------------------------------------
if __name__ == "__main__":
    N, C, H, W = 2, 16, 16, 16   # in_channels must be divisible by 8 (GroupNorm)
    key = jax.random.PRNGKey(0)
    k = jax.random.split(key, 8)

    x = jax.random.normal(k[0], (N, C, H, W), jnp.float32)
    attention_mask = jax.random.uniform(k[1], (N, H, W), jnp.float32,
                                        minval=0.0, maxval=2.0)

    w1_oihw = 0.1 * jax.random.normal(k[2], (C, C, 3, 3), jnp.float32)
    b1 = 0.1 * jax.random.normal(k[3], (C,), jnp.float32)
    gamma = 1.0 + 0.1 * jax.random.normal(k[4], (C,), jnp.float32)
    beta = 0.1 * jax.random.normal(k[5], (C,), jnp.float32)
    w2_oihw = 0.1 * jax.random.normal(k[6], (C, C, 3, 3), jnp.float32)
    b2 = 0.1 * jax.random.normal(k[7], (C,), jnp.float32)

    out = local_enhancement_pallas(x, attention_mask, w1_oihw, b1, gamma, beta,
                                   w2_oihw, b2)
    out = jax.block_until_ready(out)

    ref = ref_forward(x, attention_mask, w1_oihw, b1, gamma, beta, w2_oihw, b2)
    # Conv matmuls use bf16 MXU operands (f32 accumulation); compare against
    # the exact-f32 reference with a correspondingly widened tolerance.
    np.testing.assert_allclose(np.asarray(out), np.asarray(ref),
                               rtol=2e-2, atol=2e-2)
    print("KERNEL_OK")
</pallas_src>

<mosaic_0001>
module attributes {stable_mosaic.version = 11 : i64} {
  func.func @lem_kernel(%arg0: i32, %arg1: memref<1x16x256xf32, #tpu.memory_space<vmem>>, %arg2: memref<1x1x256xf32, #tpu.memory_space<vmem>>, %arg3: memref<9x16x256xf32, #tpu.memory_space<vmem>>, %arg4: memref<9x16x16xbf16, #tpu.memory_space<vmem>>, %arg5: memref<16x1xf32, #tpu.memory_space<vmem>>, %arg6: memref<16x1xf32, #tpu.memory_space<vmem>>, %arg7: memref<16x1xf32, #tpu.memory_space<vmem>>, %arg8: memref<9x16x16xbf16, #tpu.memory_space<vmem>>, %arg9: memref<16x1xf32, #tpu.memory_space<vmem>>, %arg10: memref<16x16xf32, #tpu.memory_space<vmem>>, %arg11: memref<1x16x256xf32, #tpu.memory_space<vmem>>) attributes {dimension_semantics = [#tpu.dimension_semantics<parallel>], iteration_bounds = array<i64: 2>, scalar_prefetch = 0 : i64, scratch_operands = 0 : i64, tpu.core_type = #tpu.core_type<tc>, window_params = [{transform_indices = @transform_0, window_bounds = array<i64: 1, 16, 256>}, {transform_indices = @transform_1, window_bounds = array<i64: 1, 1, 256>}, {pipeline_mode = #tpu.pipeline_mode<synchronous>, transform_indices = @transform_2, window_bounds = array<i64: 9, 16, 256>}, {pipeline_mode = #tpu.pipeline_mode<synchronous>, transform_indices = @transform_3, window_bounds = array<i64: 9, 16, 16>}, {pipeline_mode = #tpu.pipeline_mode<synchronous>, transform_indices = @transform_4, window_bounds = array<i64: 16, 1>}, {pipeline_mode = #tpu.pipeline_mode<synchronous>, transform_indices = @transform_5, window_bounds = array<i64: 16, 1>}, {pipeline_mode = #tpu.pipeline_mode<synchronous>, transform_indices = @transform_6, window_bounds = array<i64: 16, 1>}, {pipeline_mode = #tpu.pipeline_mode<synchronous>, transform_indices = @transform_7, window_bounds = array<i64: 9, 16, 16>}, {pipeline_mode = #tpu.pipeline_mode<synchronous>, transform_indices = @transform_8, window_bounds = array<i64: 16, 1>}, {pipeline_mode = #tpu.pipeline_mode<synchronous>, transform_indices = @transform_9, window_bounds = array<i64: 16, 16>}, {transform_indices = @transform_10, window_bounds = array<i64: 1, 16, 256>}]} {
    %c0 = arith.constant 0 : index
    %c0_0 = arith.constant 0 : index
    %c0_1 = arith.constant 0 : index
    %0 = vector.load %arg1[%c0, %c0_0, %c0_1] : memref<1x16x256xf32, #tpu.memory_space<vmem>>, vector<1x16x256xf32>
    %1 = vector.shape_cast %0 : vector<1x16x256xf32> to vector<16x256xf32>
    %c17_i32 = arith.constant 17 : i32
    %2 = tpu.dynamic_rotate %1 by %c17_i32 dim 1 : vector<16x256xf32>, i32 -> vector<16x256xf32>
    %c0_2 = arith.constant 0 : index
    %c0_3 = arith.constant 0 : index
    %c0_4 = arith.constant 0 : index
    %3 = vector.load %arg3[%c0_2, %c0_3, %c0_4] : memref<9x16x256xf32, #tpu.memory_space<vmem>>, vector<1x16x256xf32>
    %4 = vector.shape_cast %3 : vector<1x16x256xf32> to vector<16x256xf32>
    %5 = arith.mulf %2, %4 : vector<16x256xf32>
    %6 = arith.truncf %5 : vector<16x256xf32> to vector<16x256xbf16>
    %c0_5 = arith.constant 0 : index
    %c0_6 = arith.constant 0 : index
    %c0_7 = arith.constant 0 : index
    %7 = vector.load %arg4[%c0_5, %c0_6, %c0_7] : memref<9x16x16xbf16, #tpu.memory_space<vmem>>, vector<1x16x16xbf16>
    %8 = vector.shape_cast %7 : vector<1x16x16xbf16> to vector<16x16xbf16>
    %cst = arith.constant dense<0.000000e+00> : vector<16x256xf32>
    %9 = tpu.matmul %8, %6, %cst {dimension_numbers = #tpu.dot_dimension_numbers<[1], [0], [0], [1], [0, 0, 1, 1], [], []>} : vector<16x16xbf16>, vector<16x256xbf16>, vector<16x256xf32> -> vector<16x256xf32>
    %c16_i32 = arith.constant 16 : i32
    %10 = tpu.dynamic_rotate %1 by %c16_i32 dim 1 : vector<16x256xf32>, i32 -> vector<16x256xf32>
    %c1 = arith.constant 1 : index
    %c0_8 = arith.constant 0 : index
    %c0_9 = arith.constant 0 : index
    %11 = vector.load %arg3[%c1, %c0_8, %c0_9] : memref<9x16x256xf32, #tpu.memory_space<vmem>>, vector<1x16x256xf32>
    %12 = vector.shape_cast %11 : vector<1x16x256xf32> to vector<16x256xf32>
    %13 = arith.mulf %10, %12 : vector<16x256xf32>
    %14 = arith.truncf %13 : vector<16x256xf32> to vector<16x256xbf16>
    %c1_10 = arith.constant 1 : index
    %c0_11 = arith.constant 0 : index
    %c0_12 = arith.constant 0 : index
    %15 = vector.load %arg4[%c1_10, %c0_11, %c0_12] : memref<9x16x16xbf16, #tpu.memory_space<vmem>>, vector<1x16x16xbf16>
    %16 = vector.shape_cast %15 : vector<1x16x16xbf16> to vector<16x16xbf16>
    %cst_13 = arith.constant dense<0.000000e+00> : vector<16x256xf32>
    %17 = tpu.matmul %16, %14, %cst_13 {dimension_numbers = #tpu.dot_dimension_numbers<[1], [0], [0], [1], [0, 0, 1, 1], [], []>} : vector<16x16xbf16>, vector<16x256xbf16>, vector<16x256xf32> -> vector<16x256xf32>
    %18 = arith.addf %9, %17 : vector<16x256xf32>
    %c15_i32 = arith.constant 15 : i32
    %19 = tpu.dynamic_rotate %1 by %c15_i32 dim 1 : vector<16x256xf32>, i32 -> vector<16x256xf32>
    %c2 = arith.constant 2 : index
    %c0_14 = arith.constant 0 : index
    %c0_15 = arith.constant 0 : index
    %20 = vector.load %arg3[%c2, %c0_14, %c0_15] : memref<9x16x256xf32, #tpu.memory_space<vmem>>, vector<1x16x256xf32>
    %21 = vector.shape_cast %20 : vector<1x16x256xf32> to vector<16x256xf32>
    %22 = arith.mulf %19, %21 : vector<16x256xf32>
    %23 = arith.truncf %22 : vector<16x256xf32> to vector<16x256xbf16>
    %c2_16 = arith.constant 2 : index
    %c0_17 = arith.constant 0 : index
    %c0_18 = arith.constant 0 : index
    %24 = vector.load %arg4[%c2_16, %c0_17, %c0_18] : memref<9x16x16xbf16, #tpu.memory_space<vmem>>, vector<1x16x16xbf16>
    %25 = vector.shape_cast %24 : vector<1x16x16xbf16> to vector<16x16xbf16>
    %cst_19 = arith.constant dense<0.000000e+00> : vector<16x256xf32>
    %26 = tpu.matmul %25, %23, %cst_19 {dimension_numbers = #tpu.dot_dimension_numbers<[1], [0], [0], [1], [0, 0, 1, 1], [], []>} : vector<16x16xbf16>, vector<16x256xbf16>, vector<16x256xf32> -> vector<16x256xf32>
    %27 = arith.addf %18, %26 : vector<16x256xf32>
    %c1_i32 = arith.constant 1 : i32
    %28 = tpu.dynamic_rotate %1 by %c1_i32 dim 1 : vector<16x256xf32>, i32 -> vector<16x256xf32>
    %c3 = arith.constant 3 : index
    %c0_20 = arith.constant 0 : index
    %c0_21 = arith.constant 0 : index
    %29 = vector.load %arg3[%c3, %c0_20, %c0_21] : memref<9x16x256xf32, #tpu.memory_space<vmem>>, vector<1x16x256xf32>
    %30 = vector.shape_cast %29 : vector<1x16x256xf32> to vector<16x256xf32>
    %31 = arith.mulf %28, %30 : vector<16x256xf32>
    %32 = arith.truncf %31 : vector<16x256xf32> to vector<16x256xbf16>
    %c3_22 = arith.constant 3 : index
    %c0_23 = arith.constant 0 : index
    %c0_24 = arith.constant 0 : index
    %33 = vector.load %arg4[%c3_22, %c0_23, %c0_24] : memref<9x16x16xbf16, #tpu.memory_space<vmem>>, vector<1x16x16xbf16>
    %34 = vector.shape_cast %33 : vector<1x16x16xbf16> to vector<16x16xbf16>
    %cst_25 = arith.constant dense<0.000000e+00> : vector<16x256xf32>
    %35 = tpu.matmul %34, %32, %cst_25 {dimension_numbers = #tpu.dot_dimension_numbers<[1], [0], [0], [1], [0, 0, 1, 1], [], []>} : vector<16x16xbf16>, vector<16x256xbf16>, vector<16x256xf32> -> vector<16x256xf32>
    %36 = arith.addf %27, %35 : vector<16x256xf32>
    %c0_i32 = arith.constant 0 : i32
    %37 = tpu.dynamic_rotate %1 by %c0_i32 dim 1 : vector<16x256xf32>, i32 -> vector<16x256xf32>
    %c4 = arith.constant 4 : index
    %c0_26 = arith.constant 0 : index
    %c0_27 = arith.constant 0 : index
    %38 = vector.load %arg3[%c4, %c0_26, %c0_27] : memref<9x16x256xf32, #tpu.memory_space<vmem>>, vector<1x16x256xf32>
    %39 = vector.shape_cast %38 : vector<1x16x256xf32> to vector<16x256xf32>
    %40 = arith.mulf %37, %39 : vector<16x256xf32>
    %41 = arith.truncf %40 : vector<16x256xf32> to vector<16x256xbf16>
    %c4_28 = arith.constant 4 : index
    %c0_29 = arith.constant 0 : index
    %c0_30 = arith.constant 0 : index
    %42 = vector.load %arg4[%c4_28, %c0_29, %c0_30] : memref<9x16x16xbf16, #tpu.memory_space<vmem>>, vector<1x16x16xbf16>
    %43 = vector.shape_cast %42 : vector<1x16x16xbf16> to vector<16x16xbf16>
    %cst_31 = arith.constant dense<0.000000e+00> : vector<16x256xf32>
    %44 = tpu.matmul %43, %41, %cst_31 {dimension_numbers = #tpu.dot_dimension_numbers<[1], [0], [0], [1], [0, 0, 1, 1], [], []>} : vector<16x16xbf16>, vector<16x256xbf16>, vector<16x256xf32> -> vector<16x256xf32>
    %45 = arith.addf %36, %44 : vector<16x256xf32>
    %c255_i32 = arith.constant 255 : i32
    %46 = tpu.dynamic_rotate %1 by %c255_i32 dim 1 : vector<16x256xf32>, i32 -> vector<16x256xf32>
    %c5 = arith.constant 5 : index
    %c0_32 = arith.constant 0 : index
    %c0_33 = arith.constant 0 : index
    %47 = vector.load %arg3[%c5, %c0_32, %c0_33] : memref<9x16x256xf32, #tpu.memory_space<vmem>>, vector<1x16x256xf32>
    %48 = vector.shape_cast %47 : vector<1x16x256xf32> to vector<16x256xf32>
    %49 = arith.mulf %46, %48 : vector<16x256xf32>
    %50 = arith.truncf %49 : vector<16x256xf32> to vector<16x256xbf16>
    %c5_34 = arith.constant 5 : index
    %c0_35 = arith.constant 0 : index
    %c0_36 = arith.constant 0 : index
    %51 = vector.load %arg4[%c5_34, %c0_35, %c0_36] : memref<9x16x16xbf16, #tpu.memory_space<vmem>>, vector<1x16x16xbf16>
    %52 = vector.shape_cast %51 : vector<1x16x16xbf16> to vector<16x16xbf16>
    %cst_37 = arith.constant dense<0.000000e+00> : vector<16x256xf32>
    %53 = tpu.matmul %52, %50, %cst_37 {dimension_numbers = #tpu.dot_dimension_numbers<[1], [0], [0], [1], [0, 0, 1, 1], [], []>} : vector<16x16xbf16>, vector<16x256xbf16>, vector<16x256xf32> -> vector<16x256xf32>
    %54 = arith.addf %45, %53 : vector<16x256xf32>
    %c241_i32 = arith.constant 241 : i32
    %55 = tpu.dynamic_rotate %1 by %c241_i32 dim 1 : vector<16x256xf32>, i32 -> vector<16x256xf32>
    %c6 = arith.constant 6 : index
    %c0_38 = arith.constant 0 : index
    %c0_39 = arith.constant 0 : index
    %56 = vector.load %arg3[%c6, %c0_38, %c0_39] : memref<9x16x256xf32, #tpu.memory_space<vmem>>, vector<1x16x256xf32>
    %57 = vector.shape_cast %56 : vector<1x16x256xf32> to vector<16x256xf32>
    %58 = arith.mulf %55, %57 : vector<16x256xf32>
    %59 = arith.truncf %58 : vector<16x256xf32> to vector<16x256xbf16>
    %c6_40 = arith.constant 6 : index
    %c0_41 = arith.constant 0 : index
    %c0_42 = arith.constant 0 : index
    %60 = vector.load %arg4[%c6_40, %c0_41, %c0_42] : memref<9x16x16xbf16, #tpu.memory_space<vmem>>, vector<1x16x16xbf16>
    %61 = vector.shape_cast %60 : vector<1x16x16xbf16> to vector<16x16xbf16>
    %cst_43 = arith.constant dense<0.000000e+00> : vector<16x256xf32>
    %62 = tpu.matmul %61, %59, %cst_43 {dimension_numbers = #tpu.dot_dimension_numbers<[1], [0], [0], [1], [0, 0, 1, 1], [], []>} : vector<16x16xbf16>, vector<16x256xbf16>, vector<16x256xf32> -> vector<16x256xf32>
    %63 = arith.addf %54, %62 : vector<16x256xf32>
    %c240_i32 = arith.constant 240 : i32
    %64 = tpu.dynamic_rotate %1 by %c240_i32 dim 1 : vector<16x256xf32>, i32 -> vector<16x256xf32>
    %c7 = arith.constant 7 : index
    %c0_44 = arith.constant 0 : index
    %c0_45 = arith.constant 0 : index
    %65 = vector.load %arg3[%c7, %c0_44, %c0_45] : memref<9x16x256xf32, #tpu.memory_space<vmem>>, vector<1x16x256xf32>
    %66 = vector.shape_cast %65 : vector<1x16x256xf32> to vector<16x256xf32>
    %67 = arith.mulf %64, %66 : vector<16x256xf32>
    %68 = arith.truncf %67 : vector<16x256xf32> to vector<16x256xbf16>
    %c7_46 = arith.constant 7 : index
    %c0_47 = arith.constant 0 : index
    %c0_48 = arith.constant 0 : index
    %69 = vector.load %arg4[%c7_46, %c0_47, %c0_48] : memref<9x16x16xbf16, #tpu.memory_space<vmem>>, vector<1x16x16xbf16>
    %70 = vector.shape_cast %69 : vector<1x16x16xbf16> to vector<16x16xbf16>
    %cst_49 = arith.constant dense<0.000000e+00> : vector<16x256xf32>
    %71 = tpu.matmul %70, %68, %cst_49 {dimension_numbers = #tpu.dot_dimension_numbers<[1], [0], [0], [1], [0, 0, 1, 1], [], []>} : vector<16x16xbf16>, vector<16x256xbf16>, vector<16x256xf32> -> vector<16x256xf32>
    %72 = arith.addf %63, %71 : vector<16x256xf32>
    %c239_i32 = arith.constant 239 : i32
    %73 = tpu.dynamic_rotate %1 by %c239_i32 dim 1 : vector<16x256xf32>, i32 -> vector<16x256xf32>
    %c8 = arith.constant 8 : index
    %c0_50 = arith.constant 0 : index
    %c0_51 = arith.constant 0 : index
    %74 = vector.load %arg3[%c8, %c0_50, %c0_51] : memref<9x16x256xf32, #tpu.memory_space<vmem>>, vector<1x16x256xf32>
    %75 = vector.shape_cast %74 : vector<1x16x256xf32> to vector<16x256xf32>
    %76 = arith.mulf %73, %75 : vector<16x256xf32>
    %77 = arith.truncf %76 : vector<16x256xf32> to vector<16x256xbf16>
    %c8_52 = arith.constant 8 : index
    %c0_53 = arith.constant 0 : index
    %c0_54 = arith.constant 0 : index
    %78 = vector.load %arg4[%c8_52, %c0_53, %c0_54] : memref<9x16x16xbf16, #tpu.memory_space<vmem>>, vector<1x16x16xbf16>
    %79 = vector.shape_cast %78 : vector<1x16x16xbf16> to vector<16x16xbf16>
    %cst_55 = arith.constant dense<0.000000e+00> : vector<16x256xf32>
    %80 = tpu.matmul %79, %77, %cst_55 {dimension_numbers = #tpu.dot_dimension_numbers<[1], [0], [0], [1], [0, 0, 1, 1], [], []>} : vector<16x16xbf16>, vector<16x256xbf16>, vector<16x256xf32> -> vector<16x256xf32>
    %81 = arith.addf %72, %80 : vector<16x256xf32>
    %c0_56 = arith.constant 0 : index
    %c0_57 = arith.constant 0 : index
    %82 = vector.load %arg5[%c0_56, %c0_57] : memref<16x1xf32, #tpu.memory_space<vmem>>, vector<16x1xf32>
    %83 = vector.broadcast %82 : vector<16x1xf32> to vector<16x256xf32>
    %84 = arith.addf %81, %83 : vector<16x256xf32>
    %c0_58 = arith.constant 0 : index
    %c0_59 = arith.constant 0 : index
    %85 = vector.load %arg10[%c0_58, %c0_59] : memref<16x16xf32, #tpu.memory_space<vmem>>, vector<16x16xf32>
    %cst_60 = arith.constant dense<0.000000e+00> : vector<16xf32>
    %86 = vector.multi_reduction <add>, %84, %cst_60 [1] : vector<16x256xf32> to vector<16xf32>
    %87 = vector.shape_cast %86 : vector<16xf32> to vector<16x1xf32>
    %cst_61 = arith.constant dense<0.000000e+00> : vector<16x1xf32>
    %88 = tpu.matmul %85, %87, %cst_61 {dimension_numbers = #tpu.dot_dimension_numbers<[1], [0], [0], [1], [0, 0, 1, 1], [], []>} : vector<16x16xf32>, vector<16x1xf32>, vector<16x1xf32> -> vector<16x1xf32>
    %89 = vector.broadcast %88 : vector<16x1xf32> to vector<16x256xf32>
    %90 = arith.subf %84, %89 : vector<16x256xf32>
    %c0_62 = arith.constant 0 : index
    %c0_63 = arith.constant 0 : index
    %91 = vector.load %arg10[%c0_62, %c0_63] : memref<16x16xf32, #tpu.memory_space<vmem>>, vector<16x16xf32>
    %92 = arith.mulf %90, %90 : vector<16x256xf32>
    %cst_64 = arith.constant dense<0.000000e+00> : vector<16xf32>
    %93 = vector.multi_reduction <add>, %92, %cst_64 [1] : vector<16x256xf32> to vector<16xf32>
    %94 = vector.shape_cast %93 : vector<16xf32> to vector<16x1xf32>
    %cst_65 = arith.constant dense<0.000000e+00> : vector<16x1xf32>
    %95 = tpu.matmul %91, %94, %cst_65 {dimension_numbers = #tpu.dot_dimension_numbers<[1], [0], [0], [1], [0, 0, 1, 1], [], []>} : vector<16x16xf32>, vector<16x1xf32>, vector<16x1xf32> -> vector<16x1xf32>
    %cst_66 = arith.constant 9.99999974E-6 : f32
    %96 = vector.broadcast %cst_66 : f32 to vector<16x1xf32>
    %97 = arith.addf %95, %96 : vector<16x1xf32>
    %98 = math.rsqrt %97 : vector<16x1xf32>
    %c0_67 = arith.constant 0 : index
    %c0_68 = arith.constant 0 : index
    %99 = vector.load %arg6[%c0_67, %c0_68] : memref<16x1xf32, #tpu.memory_space<vmem>>, vector<16x1xf32>
    %100 = arith.mulf %98, %99 : vector<16x1xf32>
    %101 = vector.broadcast %100 : vector<16x1xf32> to vector<16x256xf32>
    %102 = arith.mulf %90, %101 : vector<16x256xf32>
    %c0_69 = arith.constant 0 : index
    %c0_70 = arith.constant 0 : index
    %103 = vector.load %arg7[%c0_69, %c0_70] : memref<16x1xf32, #tpu.memory_space<vmem>>, vector<16x1xf32>
    %104 = vector.broadcast %103 : vector<16x1xf32> to vector<16x256xf32>
    %105 = arith.addf %102, %104 : vector<16x256xf32>
    %cst_71 = arith.constant 0.000000e+00 : f32
    %106 = vector.broadcast %cst_71 : f32 to vector<16x256xf32>
    %107 = arith.maximumf %105, %106 : vector<16x256xf32>
    %c17_i32_72 = arith.constant 17 : i32
    %108 = tpu.dynamic_rotate %107 by %c17_i32_72 dim 1 : vector<16x256xf32>, i32 -> vector<16x256xf32>
    %c0_73 = arith.constant 0 : index
    %c0_74 = arith.constant 0 : index
    %c0_75 = arith.constant 0 : index
    %109 = vector.load %arg3[%c0_73, %c0_74, %c0_75] : memref<9x16x256xf32, #tpu.memory_space<vmem>>, vector<1x16x256xf32>
    %110 = vector.shape_cast %109 : vector<1x16x256xf32> to vector<16x256xf32>
    %111 = arith.mulf %108, %110 : vector<16x256xf32>
    %112 = arith.truncf %111 : vector<16x256xf32> to vector<16x256xbf16>
    %c0_76 = arith.constant 0 : index
    %c0_77 = arith.constant 0 : index
    %c0_78 = arith.constant 0 : index
    %113 = vector.load %arg8[%c0_76, %c0_77, %c0_78] : memref<9x16x16xbf16, #tpu.memory_space<vmem>>, vector<1x16x16xbf16>
    %114 = vector.shape_cast %113 : vector<1x16x16xbf16> to vector<16x16xbf16>
    %cst_79 = arith.constant dense<0.000000e+00> : vector<16x256xf32>
    %115 = tpu.matmul %114, %112, %cst_79 {dimension_numbers = #tpu.dot_dimension_numbers<[1], [0], [0], [1], [0, 0, 1, 1], [], []>} : vector<16x16xbf16>, vector<16x256xbf16>, vector<16x256xf32> -> vector<16x256xf32>
    %c16_i32_80 = arith.constant 16 : i32
    %116 = tpu.dynamic_rotate %107 by %c16_i32_80 dim 1 : vector<16x256xf32>, i32 -> vector<16x256xf32>
    %c1_81 = arith.constant 1 : index
    %c0_82 = arith.constant 0 : index
    %c0_83 = arith.constant 0 : index
    %117 = vector.load %arg3[%c1_81, %c0_82, %c0_83] : memref<9x16x256xf32, #tpu.memory_space<vmem>>, vector<1x16x256xf32>
    %118 = vector.shape_cast %117 : vector<1x16x256xf32> to vector<16x256xf32>
    %119 = arith.mulf %116, %118 : vector<16x256xf32>
    %120 = arith.truncf %119 : vector<16x256xf32> to vector<16x256xbf16>
    %c1_84 = arith.constant 1 : index
    %c0_85 = arith.constant 0 : index
    %c0_86 = arith.constant 0 : index
    %121 = vector.load %arg8[%c1_84, %c0_85, %c0_86] : memref<9x16x16xbf16, #tpu.memory_space<vmem>>, vector<1x16x16xbf16>
    %122 = vector.shape_cast %121 : vector<1x16x16xbf16> to vector<16x16xbf16>
    %cst_87 = arith.constant dense<0.000000e+00> : vector<16x256xf32>
    %123 = tpu.matmul %122, %120, %cst_87 {dimension_numbers = #tpu.dot_dimension_numbers<[1], [0], [0], [1], [0, 0, 1, 1], [], []>} : vector<16x16xbf16>, vector<16x256xbf16>, vector<16x256xf32> -> vector<16x256xf32>
    %124 = arith.addf %115, %123 : vector<16x256xf32>
    %c15_i32_88 = arith.constant 15 : i32
    %125 = tpu.dynamic_rotate %107 by %c15_i32_88 dim 1 : vector<16x256xf32>, i32 -> vector<16x256xf32>
    %c2_89 = arith.constant 2 : index
    %c0_90 = arith.constant 0 : index
    %c0_91 = arith.constant 0 : index
    %126 = vector.load %arg3[%c2_89, %c0_90, %c0_91] : memref<9x16x256xf32, #tpu.memory_space<vmem>>, vector<1x16x256xf32>
    %127 = vector.shape_cast %126 : vector<1x16x256xf32> to vector<16x256xf32>
    %128 = arith.mulf %125, %127 : vector<16x256xf32>
    %129 = arith.truncf %128 : vector<16x256xf32> to vector<16x256xbf16>
    %c2_92 = arith.constant 2 : index
    %c0_93 = arith.constant 0 : index
    %c0_94 = arith.constant 0 : index
    %130 = vector.load %arg8[%c2_92, %c0_93, %c0_94] : memref<9x16x16xbf16, #tpu.memory_space<vmem>>, vector<1x16x16xbf16>
    %131 = vector.shape_cast %130 : vector<1x16x16xbf16> to vector<16x16xbf16>
    %cst_95 = arith.constant dense<0.000000e+00> : vector<16x256xf32>
    %132 = tpu.matmul %131, %129, %cst_95 {dimension_numbers = #tpu.dot_dimension_numbers<[1], [0], [0], [1], [0, 0, 1, 1], [], []>} : vector<16x16xbf16>, vector<16x256xbf16>, vector<16x256xf32> -> vector<16x256xf32>
    %133 = arith.addf %124, %132 : vector<16x256xf32>
    %c1_i32_96 = arith.constant 1 : i32
    %134 = tpu.dynamic_rotate %107 by %c1_i32_96 dim 1 : vector<16x256xf32>, i32 -> vector<16x256xf32>
    %c3_97 = arith.constant 3 : index
    %c0_98 = arith.constant 0 : index
    %c0_99 = arith.constant 0 : index
    %135 = vector.load %arg3[%c3_97, %c0_98, %c0_99] : memref<9x16x256xf32, #tpu.memory_space<vmem>>, vector<1x16x256xf32>
    %136 = vector.shape_cast %135 : vector<1x16x256xf32> to vector<16x256xf32>
    %137 = arith.mulf %134, %136 : vector<16x256xf32>
    %138 = arith.truncf %137 : vector<16x256xf32> to vector<16x256xbf16>
    %c3_100 = arith.constant 3 : index
    %c0_101 = arith.constant 0 : index
    %c0_102 = arith.constant 0 : index
    %139 = vector.load %arg8[%c3_100, %c0_101, %c0_102] : memref<9x16x16xbf16, #tpu.memory_space<vmem>>, vector<1x16x16xbf16>
    %140 = vector.shape_cast %139 : vector<1x16x16xbf16> to vector<16x16xbf16>
    %cst_103 = arith.constant dense<0.000000e+00> : vector<16x256xf32>
    %141 = tpu.matmul %140, %138, %cst_103 {dimension_numbers = #tpu.dot_dimension_numbers<[1], [0], [0], [1], [0, 0, 1, 1], [], []>} : vector<16x16xbf16>, vector<16x256xbf16>, vector<16x256xf32> -> vector<16x256xf32>
    %142 = arith.addf %133, %141 : vector<16x256xf32>
    %c0_i32_104 = arith.constant 0 : i32
    %143 = tpu.dynamic_rotate %107 by %c0_i32_104 dim 1 : vector<16x256xf32>, i32 -> vector<16x256xf32>
    %c4_105 = arith.constant 4 : index
    %c0_106 = arith.constant 0 : index
    %c0_107 = arith.constant 0 : index
    %144 = vector.load %arg3[%c4_105, %c0_106, %c0_107] : memref<9x16x256xf32, #tpu.memory_space<vmem>>, vector<1x16x256xf32>
    %145 = vector.shape_cast %144 : vector<1x16x256xf32> to vector<16x256xf32>
    %146 = arith.mulf %143, %145 : vector<16x256xf32>
    %147 = arith.truncf %146 : vector<16x256xf32> to vector<16x256xbf16>
    %c4_108 = arith.constant 4 : index
    %c0_109 = arith.constant 0 : index
    %c0_110 = arith.constant 0 : index
    %148 = vector.load %arg8[%c4_108, %c0_109, %c0_110] : memref<9x16x16xbf16, #tpu.memory_space<vmem>>, vector<1x16x16xbf16>
    %149 = vector.shape_cast %148 : vector<1x16x16xbf16> to vector<16x16xbf16>
    %cst_111 = arith.constant dense<0.000000e+00> : vector<16x256xf32>
    %150 = tpu.matmul %149, %147, %cst_111 {dimension_numbers = #tpu.dot_dimension_numbers<[1], [0], [0], [1], [0, 0, 1, 1], [], []>} : vector<16x16xbf16>, vector<16x256xbf16>, vector<16x256xf32> -> vector<16x256xf32>
    %151 = arith.addf %142, %150 : vector<16x256xf32>
    %c255_i32_112 = arith.constant 255 : i32
    %152 = tpu.dynamic_rotate %107 by %c255_i32_112 dim 1 : vector<16x256xf32>, i32 -> vector<16x256xf32>
    %c5_113 = arith.constant 5 : index
    %c0_114 = arith.constant 0 : index
    %c0_115 = arith.constant 0 : index
    %153 = vector.load %arg3[%c5_113, %c0_114, %c0_115] : memref<9x16x256xf32, #tpu.memory_space<vmem>>, vector<1x16x256xf32>
    %154 = vector.shape_cast %153 : vector<1x16x256xf32> to vector<16x256xf32>
    %155 = arith.mulf %152, %154 : vector<16x256xf32>
    %156 = arith.truncf %155 : vector<16x256xf32> to vector<16x256xbf16>
    %c5_116 = arith.constant 5 : index
    %c0_117 = arith.constant 0 : index
    %c0_118 = arith.constant 0 : index
    %157 = vector.load %arg8[%c5_116, %c0_117, %c0_118] : memref<9x16x16xbf16, #tpu.memory_space<vmem>>, vector<1x16x16xbf16>
    %158 = vector.shape_cast %157 : vector<1x16x16xbf16> to vector<16x16xbf16>
    %cst_119 = arith.constant dense<0.000000e+00> : vector<16x256xf32>
    %159 = tpu.matmul %158, %156, %cst_119 {dimension_numbers = #tpu.dot_dimension_numbers<[1], [0], [0], [1], [0, 0, 1, 1], [], []>} : vector<16x16xbf16>, vector<16x256xbf16>, vector<16x256xf32> -> vector<16x256xf32>
    %160 = arith.addf %151, %159 : vector<16x256xf32>
    %c241_i32_120 = arith.constant 241 : i32
    %161 = tpu.dynamic_rotate %107 by %c241_i32_120 dim 1 : vector<16x256xf32>, i32 -> vector<16x256xf32>
    %c6_121 = arith.constant 6 : index
    %c0_122 = arith.constant 0 : index
    %c0_123 = arith.constant 0 : index
    %162 = vector.load %arg3[%c6_121, %c0_122, %c0_123] : memref<9x16x256xf32, #tpu.memory_space<vmem>>, vector<1x16x256xf32>
    %163 = vector.shape_cast %162 : vector<1x16x256xf32> to vector<16x256xf32>
    %164 = arith.mulf %161, %163 : vector<16x256xf32>
    %165 = arith.truncf %164 : vector<16x256xf32> to vector<16x256xbf16>
    %c6_124 = arith.constant 6 : index
    %c0_125 = arith.constant 0 : index
    %c0_126 = arith.constant 0 : index
    %166 = vector.load %arg8[%c6_124, %c0_125, %c0_126] : memref<9x16x16xbf16, #tpu.memory_space<vmem>>, vector<1x16x16xbf16>
    %167 = vector.shape_cast %166 : vector<1x16x16xbf16> to vector<16x16xbf16>
    %cst_127 = arith.constant dense<0.000000e+00> : vector<16x256xf32>
    %168 = tpu.matmul %167, %165, %cst_127 {dimension_numbers = #tpu.dot_dimension_numbers<[1], [0], [0], [1], [0, 0, 1, 1], [], []>} : vector<16x16xbf16>, vector<16x256xbf16>, vector<16x256xf32> -> vector<16x256xf32>
    %169 = arith.addf %160, %168 : vector<16x256xf32>
    %c240_i32_128 = arith.constant 240 : i32
    %170 = tpu.dynamic_rotate %107 by %c240_i32_128 dim 1 : vector<16x256xf32>, i32 -> vector<16x256xf32>
    %c7_129 = arith.constant 7 : index
    %c0_130 = arith.constant 0 : index
    %c0_131 = arith.constant 0 : index
    %171 = vector.load %arg3[%c7_129, %c0_130, %c0_131] : memref<9x16x256xf32, #tpu.memory_space<vmem>>, vector<1x16x256xf32>
    %172 = vector.shape_cast %171 : vector<1x16x256xf32> to vector<16x256xf32>
    %173 = arith.mulf %170, %172 : vector<16x256xf32>
    %174 = arith.truncf %173 : vector<16x256xf32> to vector<16x256xbf16>
    %c7_132 = arith.constant 7 : index
    %c0_133 = arith.constant 0 : index
    %c0_134 = arith.constant 0 : index
    %175 = vector.load %arg8[%c7_132, %c0_133, %c0_134] : memref<9x16x16xbf16, #tpu.memory_space<vmem>>, vector<1x16x16xbf16>
    %176 = vector.shape_cast %175 : vector<1x16x16xbf16> to vector<16x16xbf16>
    %cst_135 = arith.constant dense<0.000000e+00> : vector<16x256xf32>
    %177 = tpu.matmul %176, %174, %cst_135 {dimension_numbers = #tpu.dot_dimension_numbers<[1], [0], [0], [1], [0, 0, 1, 1], [], []>} : vector<16x16xbf16>, vector<16x256xbf16>, vector<16x256xf32> -> vector<16x256xf32>
    %178 = arith.addf %169, %177 : vector<16x256xf32>
    %c239_i32_136 = arith.constant 239 : i32
    %179 = tpu.dynamic_rotate %107 by %c239_i32_136 dim 1 : vector<16x256xf32>, i32 -> vector<16x256xf32>
    %c8_137 = arith.constant 8 : index
    %c0_138 = arith.constant 0 : index
    %c0_139 = arith.constant 0 : index
    %180 = vector.load %arg3[%c8_137, %c0_138, %c0_139] : memref<9x16x256xf32, #tpu.memory_space<vmem>>, vector<1x16x256xf32>
    %181 = vector.shape_cast %180 : vector<1x16x256xf32> to vector<16x256xf32>
    %182 = arith.mulf %179, %181 : vector<16x256xf32>
    %183 = arith.truncf %182 : vector<16x256xf32> to vector<16x256xbf16>
    %c8_140 = arith.constant 8 : index
    %c0_141 = arith.constant 0 : index
    %c0_142 = arith.constant 0 : index
    %184 = vector.load %arg8[%c8_140, %c0_141, %c0_142] : memref<9x16x16xbf16, #tpu.memory_space<vmem>>, vector<1x16x16xbf16>
    %185 = vector.shape_cast %184 : vector<1x16x16xbf16> to vector<16x16xbf16>
    %cst_143 = arith.constant dense<0.000000e+00> : vector<16x256xf32>
    %186 = tpu.matmul %185, %183, %cst_143 {dimension_numbers = #tpu.dot_dimension_numbers<[1], [0], [0], [1], [0, 0, 1, 1], [], []>} : vector<16x16xbf16>, vector<16x256xbf16>, vector<16x256xf32> -> vector<16x256xf32>
    %187 = arith.addf %178, %186 : vector<16x256xf32>
    %c0_144 = arith.constant 0 : index
    %c0_145 = arith.constant 0 : index
    %188 = vector.load %arg9[%c0_144, %c0_145] : memref<16x1xf32, #tpu.memory_space<vmem>>, vector<16x1xf32>
    %189 = vector.broadcast %188 : vector<16x1xf32> to vector<16x256xf32>
    %190 = arith.addf %187, %189 : vector<16x256xf32>
    %c0_146 = arith.constant 0 : index
    %c0_147 = arith.constant 0 : index
    %c0_148 = arith.constant 0 : index
    %191 = vector.load %arg2[%c0_146, %c0_147, %c0_148] : memref<1x1x256xf32, #tpu.memory_space<vmem>>, vector<1x1x256xf32>
    %192 = vector.shape_cast %191 : vector<1x1x256xf32> to vector<1x256xf32>
    %193 = vector.broadcast %192 : vector<1x256xf32> to vector<16x256xf32>
    %194 = arith.mulf %190, %193 : vector<16x256xf32>
    %195 = arith.addf %1, %194 : vector<16x256xf32>
    %c0_149 = arith.constant 0 : index
    %c0_150 = arith.constant 0 : index
    %c0_151 = arith.constant 0 : index
    %196 = vector.load %arg11[%c0_149, %c0_150, %c0_151] : memref<1x16x256xf32, #tpu.memory_space<vmem>>, vector<1x16x256xf32>
    %197 = vector.shape_cast %196 : vector<1x16x256xf32> to vector<16x256xf32>
    %198 = vector.shape_cast %195 : vector<16x256xf32> to vector<1x16x256xf32>
    tpu.vector_store %arg11[%c0_149, %c0_150, %c0_151], %198 {strides = array<i32>} : memref<1x16x256xf32, #tpu.memory_space<vmem>>, vector<1x16x256xf32>,
    return
  }
  func.func @transform_0(%arg0: i32) -> (i32, i32, i32) {
    %c0_i32 = arith.constant 0 : i32
    %c0_i32_0 = arith.constant 0 : i32
    %c0_i32_1 = arith.constant 0 : i32
    return %arg0, %c0_i32, %c0_i32_0 : i32, i32, i32
  }
  func.func @transform_1(%arg0: i32) -> (i32, i32, i32) {
    %c0_i32 = arith.constant 0 : i32
    %c0_i32_0 = arith.constant 0 : i32
    %c0_i32_1 = arith.constant 0 : i32
    return %arg0, %c0_i32, %c0_i32_0 : i32, i32, i32
  }
  func.func @transform_2(%arg0: i32) -> (i32, i32, i32) {
    %c0_i32 = arith.constant 0 : i32
    %c0_i32_0 = arith.constant 0 : i32
    %c0_i32_1 = arith.constant 0 : i32
    %c0_i32_2 = arith.constant 0 : i32
    return %c0_i32, %c0_i32_0, %c0_i32_1 : i32, i32, i32
  }
  func.func @transform_3(%arg0: i32) -> (i32, i32, i32) {
    %c0_i32 = arith.constant 0 : i32
    %c0_i32_0 = arith.constant 0 : i32
    %c0_i32_1 = arith.constant 0 : i32
    %c0_i32_2 = arith.constant 0 : i32
    return %c0_i32, %c0_i32_0, %c0_i32_1 : i32, i32, i32
  }
  func.func @transform_4(%arg0: i32) -> (i32, i32) {
    %c0_i32 = arith.constant 0 : i32
    %c0_i32_0 = arith.constant 0 : i32
    %c0_i32_1 = arith.constant 0 : i32
    return %c0_i32, %c0_i32_0 : i32, i32
  }
  func.func @transform_5(%arg0: i32) -> (i32, i32) {
    %c0_i32 = arith.constant 0 : i32
    %c0_i32_0 = arith.constant 0 : i32
    %c0_i32_1 = arith.constant 0 : i32
    return %c0_i32, %c0_i32_0 : i32, i32
  }
  func.func @transform_6(%arg0: i32) -> (i32, i32) {
    %c0_i32 = arith.constant 0 : i32
    %c0_i32_0 = arith.constant 0 : i32
    %c0_i32_1 = arith.constant 0 : i32
    return %c0_i32, %c0_i32_0 : i32, i32
  }
  func.func @transform_7(%arg0: i32) -> (i32, i32, i32) {
    %c0_i32 = arith.constant 0 : i32
    %c0_i32_0 = arith.constant 0 : i32
    %c0_i32_1 = arith.constant 0 : i32
    %c0_i32_2 = arith.constant 0 : i32
    return %c0_i32, %c0_i32_0, %c0_i32_1 : i32, i32, i32
  }
  func.func @transform_8(%arg0: i32) -> (i32, i32) {
    %c0_i32 = arith.constant 0 : i32
    %c0_i32_0 = arith.constant 0 : i32
    %c0_i32_1 = arith.constant 0 : i32
    return %c0_i32, %c0_i32_0 : i32, i32
  }
  func.func @transform_9(%arg0: i32) -> (i32, i32) {
    %c0_i32 = arith.constant 0 : i32
    %c0_i32_0 = arith.constant 0 : i32
    %c0_i32_1 = arith.constant 0 : i32
    return %c0_i32, %c0_i32_0 : i32, i32
  }
  func.func @transform_10(%arg0: i32) -> (i32, i32, i32) {
    %c0_i32 = arith.constant 0 : i32
    %c0_i32_0 = arith.constant 0 : i32
    %c0_i32_1 = arith.constant 0 : i32
    return %arg0, %c0_i32, %c0_i32_0 : i32, i32, i32
  }
}

</mosaic_0001>

<bundles_post_ra>
// kernel: _lem_pallas.1
= control target key start
LH: loop header
LB: loop body
LE: loop exit
PB: predicated region body
PF: predicated region fallthrough
CT: control target
= control target key end

     0   :  { %s2443_s13 = smov 0   ;;  %s3125_s0 = inlined_call_operand.vmem [shape: f32[2,16,256], index: 0, kind: input, shape index: {}]   ;;  %s3126_s1 = inlined_call_operand.vmem [shape: f32[2,1,256], index: 1, kind: input, shape index: {}]   ;;  %s3127_s2 = inlined_call_operand.vmem [shape: f32[9,16,256], index: 2, kind: input, shape index: {}]   ;;  %s3128_s3 = inlined_call_operand.vmem [shape: bf16[9,16,16], index: 3, kind: input, shape index: {}]   ;;  %s3129_s4 = inlined_call_operand.vmem [shape: f32[16,1], index: 4, kind: input, shape index: {}]   ;;  %s3130_s5 = inlined_call_operand.vmem [shape: f32[16,1], index: 5, kind: input, shape index: {}]   ;;  %s3131_s6 = inlined_call_operand.vmem [shape: f32[16,1], index: 6, kind: input, shape index: {}]   ;;  %s3132_s7 = inlined_call_operand.vmem [shape: bf16[9,16,16], index: 7, kind: input, shape index: {}]   ;;  %s3133_s8 = inlined_call_operand.vmem [shape: f32[16,1], index: 8, kind: input, shape index: {}]   ;;  %s3134_s9 = inlined_call_operand.vmem [shape: f32[16,16], index: 9, kind: input, shape index: {}]   ;;  %s3135_s10 = inlined_call_operand.vmem [shape: f32[2,16,256], index: 10, kind: output, shape index: {}]  }
   0x1 LB: > { %s2114_s14 = sadd.s32 4294967295, %s2377_s13   ;;  %p2118_p0 = scmp.ge.s32.totalorder %s2377_s13, 1  ;;  %s2377_s13 = sphi %s2443_s13, %s20_s13  }
   0x2   : > { %p321_p1 = scmp.lt.s32.totalorder %s2377_s13, 3 }
   0x4   : > { %p322_p2 = pnand %p2118_p0, %p321_p1 }
   0x5   : > { %p363_p3 = scmp.lt.s32.totalorder (!%p322_p2), %s2114_s14, 1  ;;  %v2379_v2 = vmov (!%p322_p2), 0   ;;  %s2380_s19 = smov (!%p322_p2), 16   ;;  %v1100_v5 = vld [vmem:[%s3129_s4] sm:$0xff] (!%p322_p2)  ;;  %v1101_v6 = vld [vmem:[%s3129_s4 + $0x8] sm:$0xff] (!%p322_p2)  ;;  %v390_v7 = vlaneseq (!%p322_p2)  ;;  %v2562_v14 = vld [vmem:[%s3127_s2 + $0x30] sm:$0xff] (!%p322_p2) }
   0x6   : > { %325 = sbr.rel (%p322_p2) target bundleno = 1913 (0x779), region = 60  ;;  %477 = vmatprep.mubr.bf16.mxu0 (!%p322_p2), %v2379_v2  ;;  %2343 = vset.pattern.permute.xlu0 (!%p322_p2), %v2379_v2  ;;  %s2381_s20 = smov (!%p322_p2), 17   ;;  %v2553_v11 = vld [vmem:[%s3127_s2 + $0x20] sm:$0xff] (!%p322_p2)  ;;  %v2567_v15 = vld [vmem:[%s3127_s2 + $0x28] sm:$0xff] (!%p322_p2)  ;;  %v2572_v16 = vld [vmem:[%s3127_s2 + $0x38] sm:$0xff] (!%p322_p2)  ;;  %vm441_vm2 = vcmask (!%p322_p2), 130048  }
   0x7   : > { %2344 = vset.pattern.permute.xlu1 (!%p322_p2), %v2379_v2  ;;  %s2382_s21 = smov (!%p322_p2), 15   ;;  %s2383_s22 = smov (!%p322_p2), 1   ;;  %v2547_v8 = vand.u32 (!%p322_p2), 127, %v390_v7  ;;  %v2586_v29 = vld [vmem:[%s3127_s2 + $0x10] sm:$0xff] (!%p322_p2)  ;;  %v2345_v30 = vld [vmem:[%s3128_s3 + $0x8] sm:$0xff] (!%p322_p2)   ;;  %v2594_v31 = vld [vmem:[%s3127_s2 + $0x18] sm:$0xff] (!%p322_p2) }
   0x8   : > { %s2384_s23 = smov (!%p322_p2), 127   ;;  %s2385_s24 = smov (!%p322_p2), 113   ;;  %v2599_v32 = vld [vmem:[%s3127_s2] sm:$0xff] (!%p322_p2)  ;;  %v2604_v33 = vld [vmem:[%s3127_s2 + $0x8] sm:$0xff] (!%p322_p2)  ;;  %v2624_v48 = vld [vmem:[%s3127_s2 + $0x50] sm:$0xff] (!%p322_p2) }
   0x9   : > { %s2386_s25 = smov (!%p322_p2), 112   ;;  %s3137_s26 = smov (!%p322_p2), 111   ;;  %vm417_vm0 = vcmp.lt.s32.totalorder (!%p322_p2), %v2547_v8, 16  ;;  %vm392_vm1 = vcmp.lt.s32.totalorder (!%p322_p2), %v2547_v8, 17  ;;  %vm547_vm3 = vcmp.lt.s32.totalorder (!%p322_p2), %v2547_v8, 15  ;;  %v2629_v49 = vld [vmem:[%s3127_s2 + $0x58] sm:$0xff] (!%p322_p2) }
   0xa   : > { %v2634_v50 = vld [vmem:[%s3127_s2 + $0x40] sm:$0xff] (!%p322_p2)  ;;  %v2639_v51 = vld [vmem:[%s3127_s2 + $0x48] sm:$0xff] (!%p322_p2)  ;;  %vm629_vm4 = vcmp.lt.s32.totalorder (!%p322_p2), %v2547_v8, 1  ;;  %vm780_vm5 = vcmp.lt.s32.totalorder (!%p322_p2), %v2547_v8, 127  ;;  %vm862_vm6 = vcmp.lt.s32.totalorder (!%p322_p2), %v2547_v8, 113  ;;  %vm944_vm7 = vcmp.lt.s32.totalorder (!%p322_p2), %v2547_v8, 112 }
   0xb   : > { %v2346_v62 = vld [vmem:[%s3128_s3] sm:$0xff] (!%p322_p2)   ;;  %vm1026_vm8 = vcmp.lt.s32.totalorder (!%p322_p2), %v2547_v8, 111  ;;  %v2026_v8 = vshrl.u32 (!%p322_p2), %v390_v7, 7 }
   0xd   : > { %s3142_s14 = smov (!%p363_p3, %s2114_s14), 1 }
   0xe   : > { %s3136_s15 = sshll.u32 %s3142_s14, 5  ;;  %s3140_s28 = sshll.u32 %s3142_s14, 5 }
   0xf   : > { %s2459_s18 = scalar_lea.vmem %s3125_s0, %s3136_s15  ;;  %s376_s15 = scalar_lea.vmem %s3135_s10, %s3140_s28 }
  0x10   : > { %v2462_v0 = vld [vmem:[%s2459_s18 + $0x8] sm:$0xff]  ;;  %v2465_v1 = vld [vmem:[%s2459_s18] sm:$0xff]  ;;  %v2474_v3 = vld [vmem:[%s2459_s18 + $0x18] sm:$0xff] }
  0x11   : > { %413 = vrot.lane.b32.xlu1 %v2462_v0, %s2380_s19  ;;  %409 = vrot.lane.b32.xlu0 %v2465_v1, %s2380_s19  ;;  %v2477_v4 = vld [vmem:[%s2459_s18 + $0x10] sm:$0xff] }
  0x15   : > { %415 = vrot.lane.b32.xlu1 %v2474_v3, %s2380_s19  ;;  %411 = vrot.lane.b32.xlu0 %v2477_v4, %s2380_s19 }
  0x19   : > { %384 = vrot.lane.b32.xlu1 %v2477_v4, %s2381_s20  ;;  %382 = vrot.lane.b32.xlu0 %v2465_v1, %s2381_s20 }
  0x1d   : > { %388 = vrot.lane.b32.xlu1 %v2474_v3, %s2381_s20  ;;  %386 = vrot.lane.b32.xlu0 %v2462_v0, %s2381_s20 }
  0x21   : > { %541 = vrot.lane.b32.xlu1 %v2477_v4, %s2382_s21  ;;  %539 = vrot.lane.b32.xlu0 %v2465_v1, %s2382_s21 }
  0x25   : > { %545 = vrot.lane.b32.xlu1 %v2474_v3, %s2382_s21  ;;  %543 = vrot.lane.b32.xlu0 %v2462_v0, %s2382_s21 }
  0x29   : > { %623 = vrot.lane.b32.xlu1 %v2477_v4, %s2383_s22  ;;  %621 = vrot.lane.b32.xlu0 %v2465_v1, %s2383_s22 }
  0x2d   : > { %627 = vrot.lane.b32.xlu1 %v2474_v3, %s2383_s22  ;;  %625 = vrot.lane.b32.xlu0 %v2462_v0, %s2383_s22 }
  0x31   : > { %774 = vrot.lane.b32.xlu1 %v2477_v4, %s2384_s23  ;;  %772 = vrot.lane.b32.xlu0 %v2465_v1, %s2384_s23 }
  0x35   : > { %778 = vrot.lane.b32.xlu1 %v2474_v3, %s2384_s23  ;;  %776 = vrot.lane.b32.xlu0 %v2462_v0, %s2384_s23 }
  0x39   : > { %856 = vrot.lane.b32.xlu1 %v2477_v4, %s2385_s24  ;;  %854 = vrot.lane.b32.xlu0 %v2465_v1, %s2385_s24 }
  0x3d   : > { %860 = vrot.lane.b32.xlu1 %v2474_v3, %s2385_s24  ;;  %858 = vrot.lane.b32.xlu0 %v2462_v0, %s2385_s24 }
  0x41   : > { %938 = vrot.lane.b32.xlu1 %v2477_v4, %s2386_s25  ;;  %936 = vrot.lane.b32.xlu0 %v2465_v1, %s2386_s25 }
  0x45   : > { %942 = vrot.lane.b32.xlu1 %v2474_v3, %s2386_s25  ;;  %940 = vrot.lane.b32.xlu0 %v2462_v0, %s2386_s25 }
  0x49   : > { %1020 = vrot.lane.b32.xlu1 %v2477_v4, %s3137_s26  ;;  %1018 = vrot.lane.b32.xlu0 %v2465_v1, %s3137_s26 }
  0x4d   : > { %1024 = vrot.lane.b32.xlu1 %v2474_v3, %s3137_s26  ;;  %1022 = vrot.lane.b32.xlu0 %v2462_v0, %s3137_s26 }
  0x51   : > { %1104 = vperm.xlu0 %2343, %v1100_v5   ;;  %1109 = vperm.xlu1 %2344, %v1101_v6  }
  0x83   : > { %v414_v9 = vpop.permute.xlu1 %413  ;;  %v410_v10 = vpop.permute.xlu0 %409 }
  0x84   : > { %v418_v12 = vsel %vm417_vm0, %v410_v10, %v414_v9  ;;  %v420_v13 = vsel %vm417_vm0, %v414_v9, %v410_v10  ;;  %v2661_v10 = vld [vmem:[%s3127_s2 + $0x78] sm:$0xff] }
  0x85   : > { %v427_v21 = vmul.f32 %v2553_v11, %v420_v13  ;;  %v428_v23 = vmul.f32 %v2567_v15, %v418_v12  ;;  %v2666_v12 = vld [vmem:[%s3127_s2 + $0x68] sm:$0xff]  ;;  %v2672_v13 = vld [vmem:[%s3127_s2 + $0x70] sm:$0xff] }
  0x87   : > { %v416_v17 = vpop.permute.xlu1 %415  ;;  %v412_v18 = vpop.permute.xlu0 %411 }
  0x88   : > { %v419_v19 = vsel %vm417_vm0, %v412_v18, %v416_v17  ;;  %v421_v20 = vsel %vm417_vm0, %v416_v17, %v412_v18  ;;  %v2677_v18 = vld [vmem:[%s3127_s2 + $0x60] sm:$0xff] }
  0x89   : > { %v429_v22 = vmul.f32 %v2562_v14, %v421_v20  ;;  %v430_v24 = vmul.f32 %v2572_v16, %v419_v19 }
  0x8b   : > { %v385_v25 = vpop.permute.xlu1 %384  ;;  %v383_v26 = vpop.permute.xlu0 %382  ;;  %v432_v27 = vpack.c.bf16 %v430_v24, %v428_v23  ;;  %v431_v28 = vpack.c.bf16 %v429_v22, %v427_v21  ;;  %v2690_v24 = vld [vmem:[%s3127_s2 + $0x88] sm:$0xff] }
  0x8d   : > { %445 = vmatprep.subr.bf16.mxu0 %v432_v27 }
  0x8e   : > { %446 = vmatpush1.bf16.msra.mxu0 %v431_v28 }
  0x8f   : > { %v389_v34 = vpop.permute.xlu1 %388  ;;  %v387_v35 = vpop.permute.xlu0 %386 }
  0x90   : > { %v394_v36 = vsel %vm392_vm1, %v385_v25, %v389_v34  ;;  %v396_v37 = vsel %vm392_vm1, %v389_v34, %v385_v25  ;;  %v393_v38 = vsel %vm392_vm1, %v383_v26, %v387_v35  ;;  %v395_v39 = vsel %vm392_vm1, %v387_v35, %v383_v26  ;;  %v2695_v25 = vld [vmem:[%s3127_s2 + $0x98] sm:$0xff] }
  0x91   : > { %v403_v40 = vmul.f32 %v2586_v29, %v396_v37  ;;  %v404_v41 = vmul.f32 %v2594_v31, %v394_v36  ;;  %v401_v42 = vmul.f32 %v2599_v32, %v395_v39  ;;  %v402_v43 = vmul.f32 %v2604_v33, %v393_v38  ;;  %2131 = vmatmul.mubr.msk.bf16.vlgmr.msra.gmra.mrb[0].mxu0 %vm441_vm2, %v2345_v30  ;;  %v2347_v39 = vld [vmem:[%s3128_s3 + $0x10] sm:$0xff]  }
  0x92   : > { %528 = vmatprep.mubr.bf16.mxu0 %v2379_v2  ;;  %v709_v37 = vmul.f32 %v2690_v24, %v2462_v0  ;;  %v711_v38 = vmul.f32 %v2695_v25, %v2474_v3  ;;  %v2714_v0 = vld [vmem:[%s3127_s2 + $0x80] sm:$0xff]  ;;  %v2719_v3 = vld [vmem:[%s3127_s2 + $0x90] sm:$0xff] }
  0x93   : > { %v405_v44 = vpack.c.bf16 %v403_v40, %v401_v42  ;;  %v542_v45 = vpop.permute.xlu1 %541  ;;  %v540_v46 = vpop.permute.xlu0 %539  ;;  %v406_v47 = vpack.c.bf16 %v404_v41, %v402_v43 }
  0x94   : > { %v713_v41 = vpack.c.bf16 %v711_v38, %v709_v37  ;;  %v2788_v37 = vld [vmem:[%s3127_s2 + $0xd0] sm:$0xff] }
  0x95   : > { %496 = vmatprep.subr.bf16.mxu0 %v406_v47 }
  0x96   : > { %497 = vmatpush1.bf16.msra.mxu0 %v405_v44  ;;  %v2724_v44 = vld [vmem:[%s3127_s2 + $0xb8] sm:$0xff] }
  0x97   : > { %v546_v52 = vpop.permute.xlu1 %545  ;;  %v544_v53 = vpop.permute.xlu0 %543 }
  0x98   : > { %v549_v54 = vsel %vm547_vm3, %v542_v45, %v546_v52  ;;  %v551_v55 = vsel %vm547_vm3, %v546_v52, %v542_v45  ;;  %v548_v56 = vsel %vm547_vm3, %v540_v46, %v544_v53  ;;  %v550_v57 = vsel %vm547_vm3, %v544_v53, %v540_v46  ;;  %v2731_v46 = vld [vmem:[%s3127_s2 + $0xa8] sm:$0xff] }
  0x99   : > { %v559_v58 = vmul.f32 %v2624_v48, %v551_v55  ;;  %v560_v59 = vmul.f32 %v2629_v49, %v549_v54  ;;  %v557_v60 = vmul.f32 %v2634_v50, %v550_v57  ;;  %v558_v61 = vmul.f32 %v2639_v51, %v548_v56 }
  0x9a   : > { %v708_v52 = vmul.f32 %v2714_v0, %v2465_v1  ;;  %v710_v53 = vmul.f32 %v2719_v3, %v2477_v4  ;;  %v2750_v4 = vld [vmem:[%s3127_s2 + $0xb0] sm:$0xff] }
  0x9b   : > { %v561_v63 = vpack.c.bf16 %v559_v58, %v557_v60  ;;  %v562_v5 = vpack.c.bf16 %v560_v59, %v558_v61  ;;  %v624_v6 = vpop.permute.xlu1 %623  ;;  %v622_v9 = vpop.permute.xlu0 %621  ;;  %v2348_v58 = vld [vmem:[%s3128_s3 + $0x18] sm:$0xff]  }
  0x9c   : > { %v712_v59 = vpack.c.bf16 %v710_v53, %v708_v52 }
  0x9d   : > { %2133 = vmatmul.mubr.msk.bf16.vlgmr.msra.gmra.mrb[0].mxu0 %vm441_vm2, %v2346_v62  ;;  %574 = vmatprep.subr.bf16.mxu0 %v562_v5 }
  0x9e   : > { %575 = vmatpush1.bf16.msra.mxu0 %v561_v63  ;;  %606 = vmatprep.mubr.bf16.mxu0 %v2379_v2  ;;  %v2757_v63 = vld [vmem:[%s3127_s2 + $0xa0] sm:$0xff] }
  0x9f   : > { %v628_v17 = vpop.permute.xlu1 %627  ;;  %v626_v19 = vpop.permute.xlu0 %625 }
  0xa0   : > { %v631_v20 = vsel %vm629_vm4, %v624_v6, %v628_v17  ;;  %v633_v21 = vsel %vm629_vm4, %v628_v17, %v624_v6  ;;  %v630_v22 = vsel %vm629_vm4, %v622_v9, %v626_v19  ;;  %v632_v23 = vsel %vm629_vm4, %v626_v19, %v622_v9  ;;  %v2764_v6 = vld [vmem:[%s3127_s2 + $0xd8] sm:$0xff]  ;;  %v2771_v17 = vld [vmem:[%s3127_s2 + $0xc8] sm:$0xff] }
  0xa1   : > { %v642_v26 = vmul.f32 %v2661_v10, %v631_v20  ;;  %v640_v27 = vmul.f32 %v2666_v12, %v630_v22  ;;  %v641_v28 = vmul.f32 %v2672_v13, %v633_v21  ;;  %v639_v30 = vmul.f32 %v2677_v18, %v632_v23 }
  0xa3   : > { %v644_v34 = vpack.c.bf16 %v642_v26, %v640_v27  ;;  %v775_v35 = vpop.permute.xlu1 %774  ;;  %v773_v36 = vpop.permute.xlu0 %772  ;;  %v643_v40 = vpack.c.bf16 %v641_v28, %v639_v30  ;;  %v2349_v28 = vld [vmem:[%s3128_s3 + $0x20] sm:$0xff]  }
  0xa5   : > { %656 = vmatprep.subr.bf16.mxu0 %v644_v34 }
  0xa7   : > { %v779_v42 = vpop.permute.xlu1 %778  ;;  %v777_v43 = vpop.permute.xlu0 %776 }
  0xa8   : > { %v784_v45 = vsel %vm780_vm5, %v779_v42, %v775_v35  ;;  %v783_v47 = vsel %vm780_vm5, %v777_v43, %v773_v36  ;;  %v782_v62 = vsel %vm780_vm5, %v775_v35, %v779_v42  ;;  %v781_v5 = vsel %vm780_vm5, %v773_v36, %v777_v43  ;;  %v2809_v43 = vld [vmem:[%s3127_s2 + $0xe8] sm:$0xff] }
  0xa9   : > { %2141 = vmatmul.mubr.msk.bf16.vlgmr.msra.gmra.mrb[0].mxu0 %vm441_vm2, %v2347_v39  ;;  %v793_v54 = vmul.f32 %v2724_v44, %v784_v45  ;;  %v791_v55 = vmul.f32 %v2731_v46, %v783_v47  ;;  %v792_v20 = vmul.f32 %v2750_v4, %v782_v62  ;;  %v790_v21 = vmul.f32 %v2757_v63, %v781_v5  ;;  %v2795_v39 = vld [vmem:[%s3127_s2 + $0xc0] sm:$0xff] }
  0xaa   : > { %657 = vmatpush1.bf16.msra.mxu0 %v643_v40  ;;  %688 = vmatprep.mubr.bf16.mxu0 %v2379_v2  ;;  %v2833_v5 = vld [vmem:[%s3127_s2 + $0xe0] sm:$0xff] }
  0xab   : > { %725 = vmatprep.subr.bf16.mxu0 %v713_v41  ;;  %v857_v56 = vpop.permute.xlu1 %856  ;;  %v855_v57 = vpop.permute.xlu0 %854  ;;  %v795_v60 = vpack.c.bf16 %v793_v54, %v791_v55  ;;  %v794_v30 = vpack.c.bf16 %v792_v20, %v790_v21  ;;  %v2802_v41 = vld [vmem:[%s3127_s2 + $0xf8] sm:$0xff]  ;;  %v2847_v21 = vld [vmem:[%s3127_s2 + $0x108] sm:$0xff] }
  0xaf   : > { %v861_v1 = vpop.permute.xlu1 %860  ;;  %v859_v61 = vpop.permute.xlu0 %858 }
  0xb0   : > { %v866_v9 = vsel %vm862_vm6, %v861_v1, %v857_v56  ;;  %v865_v19 = vsel %vm862_vm6, %v859_v61, %v855_v57  ;;  %v864_v38 = vsel %vm862_vm6, %v857_v56, %v861_v1  ;;  %v863_v40 = vsel %vm862_vm6, %v855_v57, %v859_v61  ;;  %v2350_v57 = vld [vmem:[%s3128_s3 + $0x28] sm:$0xff]   ;;  %v2826_v61 = vld [vmem:[%s3127_s2 + $0xf0] sm:$0xff] }
  0xb1   : > { %v875_v22 = vmul.f32 %v2764_v6, %v866_v9  ;;  %v873_v23 = vmul.f32 %v2771_v17, %v865_v19  ;;  %v874_v47 = vmul.f32 %v2788_v37, %v864_v38  ;;  %v872_v52 = vmul.f32 %v2795_v39, %v863_v40  ;;  %v2840_v19 = vld [vmem:[%s3127_s2 + $0x118] sm:$0xff]  ;;  %v2870_v40 = vld [vmem:[%s3127_s2 + $0x100] sm:$0xff] }
  0xb3   : > { %v939_v26 = vpop.permute.xlu1 %938  ;;  %v937_v27 = vpop.permute.xlu0 %936  ;;  %v877_v34 = vpack.c.bf16 %v875_v22, %v873_v23 }
  0xb5   : > { %2149 = vmatmul.mubr.msk.bf16.vlgmr.msra.gmra.mrb[0].mxu0 %vm441_vm2, %v2348_v58  ;;  %v876_v58 = vpack.c.bf16 %v874_v47, %v872_v52  ;;  %v2352_v52 = vld [vmem:[%s3128_s3 + $0x38] sm:$0xff]  }
  0xb6   : > { %726 = vmatpush1.bf16.msra.mxu0 %v712_v59  ;;  %757 = vmatprep.mubr.bf16.mxu0 %v2379_v2 }
  0xb7   : > { %807 = vmatprep.subr.bf16.mxu0 %v795_v60  ;;  %v943_v35 = vpop.permute.xlu1 %942  ;;  %v941_v36 = vpop.permute.xlu0 %940 }
  0xb8   : > { %v948_v42 = vsel %vm944_vm7, %v943_v35, %v939_v26  ;;  %v947_v45 = vsel %vm944_vm7, %v941_v36, %v937_v27  ;;  %v946_v62 = vsel %vm944_vm7, %v939_v26, %v943_v35  ;;  %v945_v9 = vsel %vm944_vm7, %v937_v27, %v941_v36  ;;  %v2863_v36 = vld [vmem:[%s3127_s2 + $0x110] sm:$0xff] }
  0xb9   : > { %v957_v53 = vmul.f32 %v2802_v41, %v948_v42  ;;  %v955_v54 = vmul.f32 %v2809_v43, %v947_v45  ;;  %v956_v23 = vmul.f32 %v2826_v61, %v946_v62  ;;  %v954_v26 = vmul.f32 %v2833_v5, %v945_v9 }
  0xbb   : > { %v1021_v55 = vpop.permute.xlu1 %1020  ;;  %v1019_v56 = vpop.permute.xlu0 %1018  ;;  %v959_v59 = vpack.c.bf16 %v957_v53, %v955_v54  ;;  %v2353_v54 = vld [vmem:[%s3128_s3 + $0x40] sm:$0xff]  }
  0xbf   : > { %v1025_v60 = vpop.permute.xlu1 %1024  ;;  %v1023_v1 = vpop.permute.xlu0 %1022 }
  0xc0   : > { %v1030_v20 = vsel %vm1026_vm8, %v1025_v60, %v1021_v55  ;;  %v1029_v22 = vsel %vm1026_vm8, %v1023_v1, %v1019_v56  ;;  %v1028_v38 = vsel %vm1026_vm8, %v1021_v55, %v1025_v60  ;;  %v1027_v42 = vsel %vm1026_vm8, %v1019_v56, %v1023_v1 }
  0xc1   : > { %2157 = vmatmul.mubr.msk.bf16.vlgmr.msra.gmra.mrb[0].mxu0 %vm441_vm2, %v2349_v28  ;;  %v1039_v27 = vmul.f32 %v2840_v19, %v1030_v20  ;;  %v1037_v28 = vmul.f32 %v2847_v21, %v1029_v22  ;;  %v1038_v45 = vmul.f32 %v2863_v36, %v1028_v38  ;;  %v1036_v47 = vmul.f32 %v2870_v40, %v1027_v42 }
  0xc2   : > { %808 = vmatpush1.bf16.msra.mxu0 %v794_v30  ;;  %839 = vmatprep.mubr.bf16.mxu0 %v2379_v2  ;;  %v2351_v30 = vld [vmem:[%s3128_s3 + $0x30] sm:$0xff]  }
  0xc3   : > { %889 = vmatprep.subr.bf16.mxu0 %v877_v34  ;;  %v958_v34 = vpack.c.bf16 %v956_v23, %v954_v26  ;;  %v1041_v35 = vpack.c.bf16 %v1039_v27, %v1037_v28  ;;  %v1040_v53 = vpack.c.bf16 %v1038_v45, %v1036_v47  ;;  %v1116_v26 = vld [vmem:[%s3134_s9] sm:$0xff] }
  0xc4   : > { %2251 = vmatprep.mubr.msk.f32.mxu1 %vm441_vm2, %v1116_v26 }
  0xcd   : > { %2165 = vmatmul.mubr.msk.bf16.vlgmr.msra.gmra.mrb[0].mxu0 %vm441_vm2, %v2350_v57 }
  0xce   : > { %890 = vmatpush1.bf16.msra.mxu0 %v876_v58  ;;  %921 = vmatprep.mubr.bf16.mxu0 %v2379_v2 }
  0xcf   : > { %971 = vmatprep.subr.bf16.mxu0 %v959_v59 }
  0xd0   : > { %v1105_v55 = vpop.permute.xlu0 %1104  ;;  %v1110_v57 = vpop.permute.xlu1 %1109 }
  0xd9   : > { %2173 = vmatmul.mubr.msk.bf16.vlgmr.msra.gmra.mrb[0].mxu0 %vm441_vm2, %v2351_v30 }
  0xda   : > { %972 = vmatpush1.bf16.msra.mxu0 %v958_v34  ;;  %1003 = vmatprep.mubr.bf16.mxu0 %v2379_v2  ;;  %v1117_v34 = vld [vmem:[%s3134_s9 + $0x8] sm:$0xff] }
  0xdb   : > { %1053 = vmatprep.subr.bf16.mxu0 %v1041_v35 }
  0xe5   : > { %2181 = vmatmul.mubr.msk.bf16.vlgmr.msra.gmra.mrb[0].mxu0 %vm441_vm2, %v2352_v52 }
  0xe6   : > { %1054 = vmatpush1.bf16.msra.mxu0 %v1040_v53  ;;  %1085 = vmatprep.mubr.bf16.mxu0 %v2379_v2 }
  0xf1   : > { %2189 = vmatmul.mubr.msk.bf16.vlgmr.msra.gmra.mrb[0].mxu0 %vm441_vm2, %v2353_v54 }
  0xf2   : > { %2244 = vmatprep.mubr.msk.f32.mxu0 %vm441_vm2, %v1116_v26 }
 0x1c4   : > { %v1087_v56 = vpop.f32.mrb[0].mxu0 }
 0x1c5   : > { %v1112_v58 = vadd.f32 %v1105_v55, %v1087_v56  ;;  %v1089_v59 = vpop.f32.mrb[1].mxu0 }
 0x1c6   : > { %v1113_v60 = vadd.f32 %v1105_v55, %v1089_v59  ;;  %v1091_v1 = vpop.f32.mrb[2].mxu0 }
 0x1c7   : > { %v1114_v62 = vadd.f32 %v1110_v57, %v1091_v1  ;;  %v1093_v9 = vpop.f32.mrb[3].mxu0 }
 0x1c8   : > { %v1115_v20 = vadd.f32 %v1110_v57, %v1093_v9  ;;  %v1118_v22 = vadd.f32 %v1113_v60, %v1112_v58 }
 0x1ca   : > { %1119 = vadd.xlane.f32.xlu1 %v1118_v22  ;;  %v1121_v23 = vadd.f32 %v1115_v20, %v1114_v62 }
 0x1cc   : > { %1122 = vadd.xlane.f32.xlu0 %v1121_v23 }
 0x257   : > { %v1120_v27 = vpop.xlane.xlu1 %1119 }
 0x259   : > { %v1123_v28 = vpop.xlane.xlu0 %1122 }
 0x25a   : > { %v2254_v30 = vpack.c.bf16 %v1123_v28, %v1120_v27  ;;  %v1307_v27 = vld [vmem:[%s3130_s5 + $0x8] sm:$0xff]  ;;  %v1306_v28 = vld [vmem:[%s3130_s5] sm:$0xff] }
 0x25c   : > { %2255 = vmatprep.subr.bf16.mxu0 %v2254_v30 }
 0x25d   : > { %2257 = vmatpush3.bf16.msra.mxu0 %v2254_v30 }
 0x260   : > { %2245 = vmatmul.mubr.msk.f32.vlgmr.msra.gmra.mrb[4].mxu0 %vm441_vm2, %v1117_v34 }
 0x333   : > { %v2246_v35 = vpop.f32.mrb[4].mxu0 }
 0x334   : > { %1212 = vperm.xlu1 %2344, %v2246_v35   ;;  %v1196_v38 = vpop.f32.mrb[5].mxu0 }
 0x335   : > { %1207 = vperm.xlu0 %2343, %v1196_v38  }
 0x3b3   : > { %v1213_v42 = vpop.permute.xlu1 %1212 }
 0x3b4   : > { %v1217_v45 = vsub.f32 %v1114_v62, %v1213_v42  ;;  %v1218_v47 = vsub.f32 %v1115_v20, %v1213_v42  ;;  %v1208_v52 = vpop.permute.xlu0 %1207  ;;  %v1324_v42 = vld [vmem:[%s3131_s6] sm:$0xff] }
 0x3b5   : > { %v1215_v53 = vsub.f32 %v1112_v58, %v1208_v52  ;;  %v1216_v54 = vsub.f32 %v1113_v60, %v1208_v52  ;;  %v1325_v52 = vld [vmem:[%s3131_s6 + $0x8] sm:$0xff] }
 0x3b6   : > { %v1221_v55 = vmul.f32 %v1217_v45, %v1217_v45  ;;  %v1222_v56 = vmul.f32 %v1218_v47, %v1218_v47 }
 0x3b7   : > { %v1219_v57 = vmul.f32 %v1215_v53, %v1215_v53  ;;  %v1220_v59 = vmul.f32 %v1216_v54, %v1216_v54 }
 0x3b8   : > { %v1226_v1 = vadd.f32 %v1222_v56, %v1221_v55 }
 0x3b9   : > { %v1223_v9 = vadd.f32 %v1220_v59, %v1219_v57 }
 0x3ba   : > { %1227 = vadd.xlane.f32.xlu0 %v1226_v1 }
 0x3bb   : > { %1224 = vadd.xlane.f32.xlu1 %v1223_v9 }
 0x447   : > { %v1228_v22 = vpop.xlane.xlu0 %1227 }
 0x448   : > { %v1225_v23 = vpop.xlane.xlu1 %1224 }
 0x449   : > { %v2258_v26 = vpack.c.bf16 %v1228_v22, %v1225_v23 }
 0x44b   : > { %2259 = vmatprep.subr.bf16.mxu1 %v2258_v26 }
 0x44c   : > { %2261 = vmatpush3.bf16.msra.mxu1 %v2258_v26 }
 0x44f   : > { %2252 = vmatmul.mubr.msk.f32.vlgmr.msra.gmra.mrb[0].mxu1 %vm441_vm2, %v1117_v34 }
 0x450   : > { %1425 = vmatprep.mubr.bf16.mxu1 %v2379_v2 }
 0x522   : > { %v2253_v62 = vpop.f32.mrb[0].mxu1 }
 0x523   : > { %v1301_v58 = vadd.f32 1e-05, %v2253_v62  ;;  %v1295_v60 = vpop.f32.mrb[1].mxu1 }
 0x524   : > { %v1296_v20 = vadd.f32 1e-05, %v1295_v60 }
 0x525   : > { %2363 = vrsqrt.f32 %v1301_v58 }
 0x526   : > { %2365 = vrsqrt.f32 %v1296_v20 }
 0x52f   : > { %v2364_v30 = vpop.eup %2363 }
 0x530   : > { %v2366_v35 = vpop.eup %2365  ;;  %v1309_v38 = vmul.f32 %v2364_v30, %v1307_v27 }
 0x531   : > { %v1308_v34 = vmul.f32 %v2366_v35, %v1306_v28 }
 0x532   : > { %1317 = vperm.xlu1 %2344, %v1309_v38  }
 0x533   : > { %1312 = vperm.xlu0 %2343, %v1308_v34  }
 0x536   : > { %1328 = vperm.xlu1 %2344, %v1324_v42  }
 0x537   : > { %1333 = vperm.xlu0 %2343, %v1325_v52  }
 0x5b1   : > { %v1318_v55 = vpop.permute.xlu1 %1317 }
 0x5b2   : > { %v1313_v56 = vpop.permute.xlu0 %1312  ;;  %v1322_v1 = vmul.f32 %v1318_v55, %v1217_v45  ;;  %v1323_v9 = vmul.f32 %v1318_v55, %v1218_v47 }
 0x5b3   : > { %v1320_v57 = vmul.f32 %v1313_v56, %v1215_v53  ;;  %v1321_v59 = vmul.f32 %v1313_v56, %v1216_v54 }
 0x5b5   : > { %v1329_v22 = vpop.permute.xlu1 %1328 }
 0x5b6   : > { %v1336_v23 = vadd.f32 %v1329_v22, %v1320_v57  ;;  %v1337_v26 = vadd.f32 %v1329_v22, %v1321_v59  ;;  %v1334_v62 = vpop.permute.xlu0 %1333 }
 0x5b7   : > { %v1338_v58 = vadd.f32 %v1334_v62, %v1322_v1  ;;  %v1339_v60 = vadd.f32 %v1334_v62, %v1323_v9 }
 0x5b8   : > { %v1340_v20 = vmax.f32 %v1336_v23, 0.0  ;;  %v1341_v27 = vmax.f32 %v1337_v26, 0.0 }
 0x5b9   : > { %v1342_v28 = vmax.f32 %v1338_v58, 0.0  ;;  %v1343_v30 = vmax.f32 %v1339_v60, 0.0 }
 0x5ba   : > { %1364 = vrot.lane.b32.xlu1 %v1340_v20, %s2380_s19  ;;  %v2910_v35 = vmul.f32 %v2690_v24, %v1341_v27  ;;  %v2913_v53 = vmul.f32 %v2714_v0, %v1340_v20  ;;  %v2007_v24 = vld [vmem:[%s3133_s8] sm:$0xff] }
 0x5bb   : > { %1366 = vrot.lane.b32.xlu0 %v1342_v28, %s2380_s19  ;;  %v2917_v45 = vmul.f32 %v2695_v25, %v1343_v30  ;;  %v2920_v47 = vmul.f32 %v2719_v3, %v1342_v28  ;;  %v2008_v25 = vld [vmem:[%s3133_s8 + $0x8] sm:$0xff] }
 0x5bd   : > { %v1644_v54 = vpack.c.bf16 %v2917_v45, %v2910_v35  ;;  %v1643_v38 = vpack.c.bf16 %v2920_v47, %v2913_v53 }
 0x5be   : > { %1368 = vrot.lane.b32.xlu1 %v1341_v27, %s2380_s19 }
 0x5bf   : > { %1370 = vrot.lane.b32.xlu0 %v1343_v30, %s2380_s19  ;;  %s3139_s19 = smov 111  }
 0x5c2   : > { %1344 = vrot.lane.b32.xlu1 %v1340_v20, %s2381_s20 }
 0x5c3   : > { %1346 = vrot.lane.b32.xlu0 %v1342_v28, %s2381_s20 }
 0x5c6   : > { %1348 = vrot.lane.b32.xlu1 %v1341_v27, %s2381_s20 }
 0x5c7   : > { %1350 = vrot.lane.b32.xlu0 %v1343_v30, %s2381_s20 }
 0x5ca   : > { %1487 = vrot.lane.b32.xlu1 %v1340_v20, %s2382_s21 }
 0x5cb   : > { %1489 = vrot.lane.b32.xlu0 %v1342_v28, %s2382_s21 }
 0x5ce   : > { %1491 = vrot.lane.b32.xlu1 %v1341_v27, %s2382_s21 }
 0x5cf   : > { %1493 = vrot.lane.b32.xlu0 %v1343_v30, %s2382_s21 }
 0x5d2   : > { %1563 = vrot.lane.b32.xlu1 %v1340_v20, %s2383_s22 }
 0x5d3   : > { %1565 = vrot.lane.b32.xlu0 %v1342_v28, %s2383_s22 }
 0x5d6   : > { %1567 = vrot.lane.b32.xlu1 %v1341_v27, %s2383_s22 }
 0x5d7   : > { %1569 = vrot.lane.b32.xlu0 %v1343_v30, %s2383_s22 }
 0x5da   : > { %1703 = vrot.lane.b32.xlu1 %v1340_v20, %s2384_s23 }
 0x5db   : > { %1705 = vrot.lane.b32.xlu0 %v1342_v28, %s2384_s23 }
 0x5de   : > { %1707 = vrot.lane.b32.xlu1 %v1341_v27, %s2384_s23 }
 0x5df   : > { %1709 = vrot.lane.b32.xlu0 %v1343_v30, %s2384_s23 }
 0x5e2   : > { %1779 = vrot.lane.b32.xlu1 %v1340_v20, %s2385_s24 }
 0x5e3   : > { %1781 = vrot.lane.b32.xlu0 %v1342_v28, %s2385_s24 }
 0x5e6   : > { %1783 = vrot.lane.b32.xlu1 %v1341_v27, %s2385_s24 }
 0x5e7   : > { %1785 = vrot.lane.b32.xlu0 %v1343_v30, %s2385_s24 }
 0x5ea   : > { %1855 = vrot.lane.b32.xlu1 %v1340_v20, %s2386_s25 }
 0x5eb   : > { %1857 = vrot.lane.b32.xlu0 %v1342_v28, %s2386_s25 }
 0x5ee   : > { %1859 = vrot.lane.b32.xlu1 %v1341_v27, %s2386_s25 }
 0x5ef   : > { %1861 = vrot.lane.b32.xlu0 %v1343_v30, %s2386_s25  ;;  %s2121_s25 = sshll.u32 %s3142_s14, 1 }
 0x5f0   : > { %s371_s27 = scalar_lea.vmem %s3126_s1, %s2121_s25 }
 0x5f2   : > { %1931 = vrot.lane.b32.xlu1 %v1340_v20, %s3139_s19 }
 0x5f3   : > { %1933 = vrot.lane.b32.xlu0 %v1342_v28, %s3139_s19 }
 0x5f6   : > { %1935 = vrot.lane.b32.xlu1 %v1341_v27, %s3139_s19 }
 0x5f7   : > { %1937 = vrot.lane.b32.xlu0 %v1343_v30, %s3139_s19 }
 0x5fa   : > { %2011 = vperm.xlu1 %2344, %v2007_v24  }
 0x5fb   : > { %2016 = vperm.xlu0 %2343, %v2008_v25  }
 0x62c   : > { %v1365_v0 = vpop.permute.xlu1 %1364 }
 0x62d   : > { %v1367_v3 = vpop.permute.xlu0 %1366 }
 0x630   : > { %v1369_v34 = vpop.permute.xlu1 %1368 }
 0x631   : > { %v1372_v42 = vsel %vm417_vm0, %v1365_v0, %v1369_v34  ;;  %v1374_v52 = vsel %vm417_vm0, %v1369_v34, %v1365_v0  ;;  %v1371_v55 = vpop.permute.xlu0 %1370 }
 0x632   : > { %v1376_v56 = vmul.f32 %v2553_v11, %v1374_v52  ;;  %v1377_v57 = vmul.f32 %v2567_v15, %v1372_v42  ;;  %v1373_v59 = vsel %vm417_vm0, %v1367_v3, %v1371_v55  ;;  %v1375_v1 = vsel %vm417_vm0, %v1371_v55, %v1367_v3  ;;  %v2354_v11 = vld [vmem:[%s3132_s7 + $0x8] sm:$0xff]  }
 0x633   : > { %v1378_v9 = vmul.f32 %v2562_v14, %v1375_v1  ;;  %v1379_v22 = vmul.f32 %v2572_v16, %v1373_v59 }
 0x634   : > { %v1345_v23 = vpop.permute.xlu1 %1344 }
 0x635   : > { %v1380_v26 = vpack.c.bf16 %v1378_v9, %v1376_v56  ;;  %v1347_v62 = vpop.permute.xlu0 %1346  ;;  %v1381_v58 = vpack.c.bf16 %v1379_v22, %v1377_v57  ;;  %v2355_v9 = vld [vmem:[%s3132_s7] sm:$0xff]  }
 0x637   : > { %1393 = vmatprep.subr.bf16.mxu1 %v1381_v58 }
 0x638   : > { %v1349_v15 = vpop.permute.xlu1 %1348  ;;  %1394 = vmatpush1.bf16.msra.mxu1 %v1380_v26 }
 0x639   : > { %v1352_v60 = vsel %vm392_vm1, %v1345_v23, %v1349_v15  ;;  %v1354_v20 = vsel %vm392_vm1, %v1349_v15, %v1345_v23  ;;  %v1351_v14 = vpop.permute.xlu0 %1350 }
 0x63a   : > { %v1356_v16 = vmul.f32 %v1354_v20, %v2599_v32  ;;  %v1357_v27 = vmul.f32 %v1352_v60, %v2604_v33  ;;  %v1353_v28 = vsel %vm392_vm1, %v1347_v62, %v1351_v14  ;;  %v1355_v30 = vsel %vm392_vm1, %v1351_v14, %v1347_v62 }
 0x63b   : > { %v1358_v24 = vmul.f32 %v1355_v30, %v2586_v29  ;;  %v1359_v25 = vmul.f32 %v1353_v28, %v2594_v31  ;;  %2197 = vmatmul.mubr.msk.bf16.vlgmr.msra.gmra.mrb[4].mxu1 %vm441_vm2, %v2354_v11 }
 0x63c   : > { %v1488_v0 = vpop.permute.xlu1 %1487  ;;  %1476 = vmatprep.mubr.bf16.mxu1 %v2379_v2 }
 0x63d   : > { %v1360_v3 = vpack.c.bf16 %v1358_v24, %v1356_v16  ;;  %v1490_v34 = vpop.permute.xlu0 %1489  ;;  %v1361_v32 = vpack.c.bf16 %v1359_v25, %v1357_v27 }
 0x63f   : > { %1444 = vmatprep.subr.bf16.mxu1 %v1361_v32  ;;  %v2357_v32 = vld [vmem:[%s3132_s7 + $0x18] sm:$0xff]  }
 0x640   : > { %v1492_v33 = vpop.permute.xlu1 %1491  ;;  %1445 = vmatpush1.bf16.msra.mxu1 %v1360_v3 }
 0x641   : > { %v1495_v42 = vsel %vm547_vm3, %v1488_v0, %v1492_v33  ;;  %v1497_v52 = vsel %vm547_vm3, %v1492_v33, %v1488_v0  ;;  %v1494_v29 = vpop.permute.xlu0 %1493 }
 0x642   : > { %v1499_v31 = vmul.f32 %v2634_v50, %v1497_v52  ;;  %v1500_v55 = vmul.f32 %v2639_v51, %v1495_v42  ;;  %v1496_v56 = vsel %vm547_vm3, %v1490_v34, %v1494_v29  ;;  %v1498_v57 = vsel %vm547_vm3, %v1494_v29, %v1490_v34 }
 0x643   : > { %v1501_v59 = vmul.f32 %v2624_v48, %v1498_v57  ;;  %v1502_v1 = vmul.f32 %v2629_v49, %v1496_v56 }
 0x644   : > { %v1564_v22 = vpop.permute.xlu1 %1563 }
 0x645   : > { %v1503_v23 = vpack.c.bf16 %v1501_v59, %v1499_v31  ;;  %v1566_v26 = vpop.permute.xlu0 %1565  ;;  %v1504_v50 = vpack.c.bf16 %v1502_v1, %v1500_v55  ;;  %v2358_v55 = vld [vmem:[%s3132_s7 + $0x20] sm:$0xff]  }
 0x647   : > { %2199 = vmatmul.mubr.msk.bf16.vlgmr.msra.gmra.mrb[4].mxu1 %vm441_vm2, %v2355_v9  ;;  %1516 = vmatprep.subr.bf16.mxu1 %v1504_v50 }
 0x648   : > { %v1568_v51 = vpop.permute.xlu1 %1567  ;;  %1517 = vmatpush1.bf16.msra.mxu1 %v1503_v23  ;;  %1548 = vmatprep.mubr.bf16.mxu1 %v2379_v2 }
 0x649   : > { %v1571_v48 = vsel %vm629_vm4, %v1564_v22, %v1568_v51  ;;  %v1570_v62 = vpop.permute.xlu0 %1569  ;;  %v1573_v11 = vsel %vm629_vm4, %v1568_v51, %v1564_v22 }
 0x64a   : > { %v1576_v49 = vmul.f32 %v2666_v12, %v1571_v48  ;;  %v1572_v58 = vsel %vm629_vm4, %v1566_v26, %v1570_v62  ;;  %v1574_v15 = vsel %vm629_vm4, %v1570_v62, %v1566_v26  ;;  %v1575_v14 = vmul.f32 %v2677_v18, %v1573_v11  ;;  %v2356_v12 = vld [vmem:[%s3132_s7 + $0x10] sm:$0xff]   ;;  %v2359_v48 = vld [vmem:[%s3132_s7 + $0x28] sm:$0xff]  }
 0x64b   : > { %v1578_v60 = vmul.f32 %v2661_v10, %v1572_v58  ;;  %v1577_v16 = vmul.f32 %v2672_v13, %v1574_v15 }
 0x64c   : > { %v1704_v27 = vpop.permute.xlu1 %1703 }
 0x64d   : > { %v1580_v20 = vpack.c.bf16 %v1578_v60, %v1576_v49  ;;  %v1706_v28 = vpop.permute.xlu0 %1705  ;;  %v1579_v30 = vpack.c.bf16 %v1577_v16, %v1575_v14  ;;  %v2360_v16 = vld [vmem:[%s3132_s7 + $0x30] sm:$0xff]  }
 0x64f   : > { %1592 = vmatprep.subr.bf16.mxu1 %v1580_v20 }
 0x650   : > { %v1708_v24 = vpop.permute.xlu1 %1707 }
 0x651   : > { %v1710_v10 = vpop.permute.xlu0 %1709  ;;  %v1713_v13 = vsel %vm780_vm5, %v1708_v24, %v1704_v27 }
 0x652   : > { %v1714_v18 = vsel %vm780_vm5, %v1710_v10, %v1706_v28  ;;  %v1716_v25 = vmul.f32 %v2731_v46, %v1713_v13  ;;  %v1712_v46 = vsel %vm780_vm5, %v1706_v28, %v1710_v10  ;;  %v2031_v10 = vsub.s32 1, %v2026_v8 }
 0x653   : > { %2203 = vmatmul.mubr.msk.bf16.vlgmr.msra.gmra.mrb[4].mxu1 %vm441_vm2, %v2356_v12  ;;  %v1718_v0 = vmul.f32 %v2724_v44, %v1714_v18  ;;  %v1711_v44 = vsel %vm780_vm5, %v1704_v27, %v1708_v24  ;;  %v1717_v47 = vmul.f32 %v2750_v4, %v1712_v46  ;;  %v2361_v12 = vld [vmem:[%s3132_s7 + $0x38] sm:$0xff]   ;;  %v2362_v24 = vld [vmem:[%s3132_s7 + $0x40] sm:$0xff]  }
 0x654   : > { %1593 = vmatpush1.bf16.msra.mxu1 %v1579_v30  ;;  %1624 = vmatprep.mubr.bf16.mxu1 %v2379_v2  ;;  %v1780_v3 = vpop.permute.xlu1 %1779  ;;  %v1715_v53 = vmul.f32 %v2757_v63, %v1711_v44 }
 0x655   : > { %1656 = vmatprep.subr.bf16.mxu1 %v1644_v54  ;;  %v1782_v34 = vpop.permute.xlu0 %1781  ;;  %v1720_v35 = vpack.c.bf16 %v1718_v0, %v1716_v25 }
 0x656   : > { %v1719_v56 = vpack.c.bf16 %v1717_v47, %v1715_v53  ;;  %v2368_v47 = vld [vmem:[%s2459_s18 + $0x8] sm:$0xff] }
 0x658   : > { %v1784_v45 = vpop.permute.xlu1 %1783 }
 0x659   : > { %v1786_v54 = vpop.permute.xlu0 %1785  ;;  %v1789_v33 = vsel %vm862_vm6, %v1784_v45, %v1780_v3  ;;  %v1787_v4 = vsel %vm862_vm6, %v1780_v3, %v1784_v45 }
 0x65a   : > { %v1790_v42 = vsel %vm862_vm6, %v1786_v54, %v1782_v34  ;;  %v1791_v9 = vmul.f32 %v2795_v39, %v1787_v4 }
 0x65b   : > { %v1794_v52 = vmul.f32 %v2764_v6, %v1790_v42  ;;  %v1788_v6 = vsel %vm862_vm6, %v1782_v34, %v1786_v54 }
 0x65c   : > { %v1856_v29 = vpop.permute.xlu1 %1855  ;;  %v1793_v22 = vmul.f32 %v2788_v37, %v1788_v6 }
 0x65d   : > { %v1858_v31 = vpop.permute.xlu0 %1857 }
 0x65e   : > { %v1795_v62 = vpack.c.bf16 %v1793_v22, %v1791_v9 }
 0x65f   : > { %2207 = vmatmul.mubr.msk.bf16.vlgmr.msra.gmra.mrb[4].mxu1 %vm441_vm2, %v2357_v32 }
 0x660   : > { %1657 = vmatpush1.bf16.msra.mxu1 %v1643_v38  ;;  %1688 = vmatprep.mubr.bf16.mxu1 %v2379_v2  ;;  %v1792_v38 = vmul.f32 %v2771_v17, %v1789_v33  ;;  %v1860_v63 = vpop.permute.xlu1 %1859  ;;  %v2367_v33 = vld [vmem:[%s2459_s18] sm:$0xff] }
 0x661   : > { %1732 = vmatprep.subr.bf16.mxu1 %v1720_v35  ;;  %v1862_v59 = vpop.permute.xlu0 %1861  ;;  %v1865_v17 = vsel %vm944_vm7, %v1860_v63, %v1856_v29  ;;  %v1863_v37 = vsel %vm944_vm7, %v1856_v29, %v1860_v63  ;;  %v2369_v29 = vld [vmem:[%s2459_s18 + $0x10] sm:$0xff] }
 0x662   : > { %v1796_v57 = vpack.c.bf16 %v1794_v52, %v1792_v38  ;;  %v1866_v1 = vsel %vm944_vm7, %v1862_v59, %v1858_v31  ;;  %v1868_v23 = vmul.f32 %v2809_v43, %v1865_v17  ;;  %v1867_v15 = vmul.f32 %v2833_v5, %v1863_v37 }
 0x663   : > { %v1870_v26 = vmul.f32 %v2802_v41, %v1866_v1  ;;  %v1864_v41 = vsel %vm944_vm7, %v1858_v31, %v1862_v59 }
 0x664   : > { %v1932_v50 = vpop.permute.xlu1 %1931  ;;  %v1869_v60 = vmul.f32 %v2826_v61, %v1864_v41 }
 0x665   : > { %v1934_v51 = vpop.permute.xlu0 %1933  ;;  %v1872_v49 = vpack.c.bf16 %v1870_v26, %v1868_v23 }
 0x666   : > { %v1871_v27 = vpack.c.bf16 %v1869_v60, %v1867_v15 }
 0x668   : > { %v1936_v39 = vpop.permute.xlu1 %1935 }
 0x669   : > { %v1938_v58 = vpop.permute.xlu0 %1937  ;;  %v1941_v43 = vsel %vm1026_vm8, %v1936_v39, %v1932_v50  ;;  %v1939_v61 = vsel %vm1026_vm8, %v1932_v50, %v1936_v39 }
 0x66a   : > { %v1942_v11 = vsel %vm1026_vm8, %v1938_v58, %v1934_v51  ;;  %v1944_v20 = vmul.f32 %v2847_v21, %v1941_v43  ;;  %v1940_v5 = vsel %vm1026_vm8, %v1934_v51, %v1938_v58 }
 0x66b   : > { %2211 = vmatmul.mubr.msk.bf16.vlgmr.msra.gmra.mrb[4].mxu1 %vm441_vm2, %v2358_v55  ;;  %v1946_v14 = vmul.f32 %v2840_v19, %v1942_v11  ;;  %v1943_v19 = vmul.f32 %v2870_v40, %v1939_v61  ;;  %v1945_v21 = vmul.f32 %v2863_v36, %v1940_v5  ;;  %v2027_v36 = vsub.s32 0, %v2026_v8  ;;  %v2023_v40 = vld [vmem:[%s371_s27] sm:$0x3]  ;;  %v2370_v55 = vld [vmem:[%s2459_s18 + $0x18] sm:$0xff] }
 0x66c   : > { %1733 = vmatpush1.bf16.msra.mxu1 %v1719_v56  ;;  %1764 = vmatprep.mubr.bf16.mxu1 %v2379_v2  ;;  %v2032_v25 = vrot.slane %v2023_v40, %v2031_v10 }
 0x66d   : > { %1808 = vmatprep.subr.bf16.mxu1 %v1796_v57  ;;  %v1948_v28 = vpack.c.bf16 %v1946_v14, %v1944_v20  ;;  %v1947_v30 = vpack.c.bf16 %v1945_v21, %v1943_v19  ;;  %v2028_v13 = vrot.slane %v2023_v40, %v2027_v36 }
 0x677   : > { %2215 = vmatmul.mubr.msk.bf16.vlgmr.msra.gmra.mrb[4].mxu1 %vm441_vm2, %v2359_v48 }
 0x678   : > { %1809 = vmatpush1.bf16.msra.mxu1 %v1795_v62  ;;  %1840 = vmatprep.mubr.bf16.mxu1 %v2379_v2 }
 0x679   : > { %1884 = vmatprep.subr.bf16.mxu1 %v1872_v49 }
 0x67a   : > { %v2017_v34 = vpop.permute.xlu0 %2016 }
 0x683   : > { %2219 = vmatmul.mubr.msk.bf16.vlgmr.msra.gmra.mrb[4].mxu1 %vm441_vm2, %v2360_v16 }
 0x684   : > { %1885 = vmatpush1.bf16.msra.mxu1 %v1871_v27  ;;  %1916 = vmatprep.mubr.bf16.mxu1 %v2379_v2 }
 0x685   : > { %1960 = vmatprep.subr.bf16.mxu1 %v1948_v28 }
 0x68f   : > { %2223 = vmatmul.mubr.msk.bf16.vlgmr.msra.gmra.mrb[4].mxu1 %vm441_vm2, %v2361_v12 }
 0x690   : > { %1961 = vmatpush1.bf16.msra.mxu1 %v1947_v30  ;;  %1992 = vmatprep.mubr.bf16.mxu1 %v2379_v2  ;;  %v2012_v2 = vpop.permute.xlu1 %2011 }
 0x69b   : > { %2227 = vmatmul.mubr.msk.bf16.vlgmr.msra.gmra.mrb[4].mxu1 %vm441_vm2, %v2362_v24 }
 0x76e   : > { %v1994_v18 = vpop.f32.mrb[4].mxu1 }
 0x76f   : > { %v2019_v0 = vadd.f32 %v2012_v2, %v1994_v18  ;;  %v1996_v3 = vpop.f32.mrb[5].mxu1 }
 0x770   : > { %v2020_v32 = vadd.f32 %v2012_v2, %v1996_v3  ;;  %v1998_v7 = vpop.f32.mrb[6].mxu1 }
 0x771   : > { %v2035_v35 = vmul.f32 %v2028_v13, %v2019_v0  ;;  %v2021_v45 = vadd.f32 %v2017_v34, %v1998_v7  ;;  %v2000_v54 = vpop.f32.mrb[7].mxu1 }
 0x772   : > { %v2036_v44 = vmul.f32 %v2032_v25, %v2020_v32  ;;  %v2022_v46 = vadd.f32 %v2017_v34, %v2000_v54 }
 0x773   : > { %v2039_v42 = vadd.f32 %v2367_v33, %v2035_v35  ;;  %v2037_v53 = vmul.f32 %v2028_v13, %v2021_v45 }
 0x774   : > { %v2040_v38 = vadd.f32 %v2368_v47, %v2036_v44  ;;  %v2038_v52 = vmul.f32 %v2032_v25, %v2022_v46 }
 0x775   : > { %2043 = vst [vmem:[%s376_s15] sm:$0xff] %v2039_v42  ;;  %v2041_v31 = vadd.f32 %v2369_v29, %v2037_v53 }
 0x776   : > { %2044 = vst [vmem:[%s376_s15 + $0x8] sm:$0xff] %v2040_v38  ;;  %v2042_v56 = vadd.f32 %v2370_v55, %v2038_v52 }
 0x777   : > { %2045 = vst [vmem:[%s376_s15 + $0x10] sm:$0xff] %v2041_v31 }
 0x778   : > { %2046 = vst [vmem:[%s376_s15 + $0x18] sm:$0xff] %v2042_v56 }
 0x779 PF: > { %s20_s13 = sadd.s32 1, %s2377_s13  }
 0x77a   : > { %p17_p4 = scmp.ge.s32.totalorder %s20_s13, 4  }
 0x77c   :  { %19 = sbr.rel (!%p17_p4) target bundleno = 1 (0x1), region = 117 }

</bundles_post_ra>
